<compile_context>
chip_gen: v6e
topology: v6e:2x2x1
jax: 0.10.0
libtpu: 0.0.40
codegen_flags: <defaults>
</compile_context>

<pallas_src>
import math
import jax
import jax.numpy as jnp
from jax import lax
from jax.experimental import pallas as pl
from jax.experimental.pallas import tpu as pltpu

# ----------------------------- model config (small) -------------------------
B = 2            # batch
S = 8            # sequence length
D_MODEL = 32     # d_model
N_HEADS = 4      # attention heads
HEAD_DIM = D_MODEL // N_HEADS
D_FF = 64        # feed-forward hidden
N_LAYERS = 2     # encoder layers
SRC_VOCAB = 50
TGT_VOCAB = 16
LN_EPS = 1e-5
ATTN_SCALE = 1.0 / math.sqrt(HEAD_DIM)

LANE = 128                       # lane padding for every slab / the output
VPAD = LANE                      # padded vocab / padded ffn row count

# weight-slab row layout (per layer, stride L_STRIDE_W rows; all 128 lanes wide)
OFF_WQKV = 0                     # (32, 128): cols 0:96 = [Wq | Wk | Wv]
OFF_WO = 32                      # (32, 128): cols 0:32 = Wo
OFF_W1 = 64                      # (32, 128): cols 0:64 = W1
OFF_W2 = 96                      # (128,128): rows 0:64, cols 0:32 = W2 (natural orientation)
L_STRIDE_W = OFF_W2 + VPAD       # 224
W_ROWS = N_LAYERS * L_STRIDE_W + D_MODEL   # + lr_w rows -> 480

# bias/LN-slab row layout (per layer, stride 8 rows)
L_STRIDE_V = 8                   # [bqkv, bo, b1, b2, ln1_g, ln1_b, ln2_g, ln2_b]
V_ROWS_RAW = N_LAYERS * L_STRIDE_V + 1     # + lr_b row -> 17 (padded to 24)


# ----------------------------- in-kernel helpers ----------------------------
def _layer_norm(x, gamma, beta):
    # x: (M, D), gamma/beta: (1, D); biased variance, matching PyTorch LayerNorm.
    mean = jnp.mean(x, axis=-1, keepdims=True)
    var = jnp.mean((x - mean) ** 2, axis=-1, keepdims=True)
    return (x - mean) * lax.rsqrt(var + LN_EPS) * gamma + beta


def _mm(a, b):
    """MXU matmul: bf16 operands, f32 accumulation."""
    return jnp.dot(a.astype(jnp.bfloat16), b.astype(jnp.bfloat16),
                   preferred_element_type=jnp.float32)


def _mm_tb(a, b):
    """a @ b.T (contract the last dim of both): bf16 operands, f32 accumulation."""
    return lax.dot_general(a.astype(jnp.bfloat16), b.astype(jnp.bfloat16),
                           dimension_numbers=(((1,), (1,)), ((), ())),
                           preferred_element_type=jnp.float32)


# ----------------------------- the fused Pallas kernel ----------------------
def tagger_kernel(x_ref, w_ref, v_ref, out_ref):
    """Entire TaggerModel forward (post-embedding) in one gridless kernel call.

    x_ref   : (B*S, D)      f32 activations, batch folded into M
    w_ref   : (480, 128)    bf16 weight slab (layer-stacked, lane-padded, see OFF_*)
    v_ref   : (24, 128)     f32 bias / LayerNorm slab (8 rows per layer + lr_b)
    out_ref : (B*S, 128)    f32 log-probs (softmax over the S axis), lane-padded
    """
    xm = x_ref[...]                                                    # (16, 32) f32

    for l in range(N_LAYERS):                                          # static unroll
        wb = l * L_STRIDE_W
        vb = l * L_STRIDE_V
        wqkv = w_ref[wb + OFF_WQKV: wb + OFF_WQKV + D_MODEL, :]        # (32,128) bf16
        wo = w_ref[wb + OFF_WO: wb + OFF_WO + D_MODEL, 0:D_MODEL]      # (32,32)
        w1 = w_ref[wb + OFF_W1: wb + OFF_W1 + D_MODEL, :]              # (32,128)
        w2 = w_ref[wb + OFF_W2: wb + OFF_W2 + VPAD, 0:D_MODEL]         # (128,32) natural
        bqkv = v_ref[vb + 0: vb + 1, :]                                # (1,128) f32
        bo = v_ref[vb + 1: vb + 2, 0:D_MODEL]
        b1 = v_ref[vb + 2: vb + 3, :]                                  # (1,128)
        b2 = v_ref[vb + 3: vb + 4, 0:D_MODEL]
        ln1_g = v_ref[vb + 4: vb + 5, 0:D_MODEL]
        ln1_b = v_ref[vb + 5: vb + 6, 0:D_MODEL]
        ln2_g = v_ref[vb + 6: vb + 7, 0:D_MODEL]
        ln2_b = v_ref[vb + 7: vb + 8, 0:D_MODEL]

        # ---- multi-head self-attention: ONE fused QKV matmul for both rows --
        qkv = _mm(xm, wqkv) + bqkv                                     # (16,128) f32
        ctx_rows = []
        for b in range(B):                                             # static, B=2
            qkv_b = qkv[b * S:(b + 1) * S, :]                          # (8,128) sublane slice
            heads = []
            for h in range(N_HEADS):                                   # static, H=4
                q = qkv_b[:, h * HEAD_DIM:(h + 1) * HEAD_DIM]                      # (8,8)
                k = qkv_b[:, D_MODEL + h * HEAD_DIM: D_MODEL + (h + 1) * HEAD_DIM]
                v = qkv_b[:, 2 * D_MODEL + h * HEAD_DIM: 2 * D_MODEL + (h + 1) * HEAD_DIM]
                s = _mm_tb(q, k) * ATTN_SCALE                          # (8,8)
                # no max-subtraction: |s| << 1 here, exp cannot overflow (see header)
                p = jnp.exp(s)
                p = p * pl.reciprocal(jnp.sum(p, axis=-1, keepdims=True), approx=True)
                heads.append(_mm(p, v))                                # (8,8)
            ctx_rows.append(jnp.concatenate(heads, axis=1))            # (8,32)
        ctx = jnp.concatenate(ctx_rows, axis=0)                        # (16,32)
        attn = _mm(ctx, wo) + bo                                       # (16,32)
        x1 = _layer_norm(xm + attn, ln1_g, ln1_b)

        # ---- feed-forward, batch folded into M, lane-dense matmuls ----------
        h1 = jnp.maximum(_mm(x1, w1) + b1, 0.0)                        # (16,128), cols>=64 are 0
        ffn = _mm(h1, w2) + b2                                         # (16,32), plain dot (no trans-B)
        xm = _layer_norm(x1 + ffn, ln2_g, ln2_b)

    # ---- head: Linear + EXACT log_softmax over the sequence axis (dim=1) ----
    lr_w = w_ref[N_LAYERS * L_STRIDE_W: N_LAYERS * L_STRIDE_W + D_MODEL, :]   # (32,128)
    lr_b = v_ref[N_LAYERS * L_STRIDE_V: N_LAYERS * L_STRIDE_V + 1, :]         # (1,128)
    logits = _mm(xm, lr_w) + lr_b                                             # (16,128)
    outs = []
    for b in range(B):                                                 # static unroll
        lb = logits[b * S:(b + 1) * S, :]                              # (8,128)
        m = jnp.max(lb, axis=0, keepdims=True)
        lse = m + jnp.log(jnp.sum(jnp.exp(lb - m), axis=0, keepdims=True))
        outs.append(lb - lse)
    out_ref[...] = jnp.concatenate(outs, axis=0)                       # ONE lane-dense store


# ----------------------------- pallas_call wrapper ---------------------------
def tagger_pallas(x_flat, w_slab, v_slab):
    vmem = lambda: pl.BlockSpec(memory_space=pltpu.MemorySpace.VMEM)
    return pl.pallas_call(
        tagger_kernel,
        out_shape=jax.ShapeDtypeStruct((B * S, VPAD), jnp.float32),
        in_specs=[vmem(), vmem(), vmem()],
        out_specs=vmem(),
    )(x_flat, w_slab, v_slab)


# ----------------------------- params: init + packing ------------------------
def positional_encoding(seq_len, d_model):
    pos = jnp.arange(seq_len, dtype=jnp.float32)[:, None]
    i = jnp.arange(0, d_model, 2, dtype=jnp.float32)
    angle = pos / jnp.power(10000.0, i / d_model)
    pe = jnp.zeros((seq_len, d_model), dtype=jnp.float32)
    pe = pe.at[:, 0::2].set(jnp.sin(angle))
    pe = pe.at[:, 1::2].set(jnp.cos(angle))
    return pe


def init_params(key):
    """Canonical (PyTorch-like) layout: weights stored (in_features, out_features)."""
    def dense(k, shape, scale=0.02):
        return (scale * jax.random.normal(k, shape)).astype(jnp.float32)

    keys = jax.random.split(key, 4 + N_LAYERS)
    params = {
        "embedding": dense(keys[0], (SRC_VOCAB, D_MODEL), scale=1.0 / math.sqrt(D_MODEL)),
        "lr_w": dense(keys[1], (D_MODEL, TGT_VOCAB)),
        "lr_b": jnp.zeros((1, TGT_VOCAB), jnp.float32),
        "layers": [],
    }
    for l in range(N_LAYERS):
        lk = jax.random.split(keys[4 + l], 6)
        params["layers"].append({
            "wq": dense(lk[0], (D_MODEL, D_MODEL)), "bq": jnp.zeros((1, D_MODEL), jnp.float32),
            "wk": dense(lk[1], (D_MODEL, D_MODEL)), "bk": jnp.zeros((1, D_MODEL), jnp.float32),
            "wv": dense(lk[2], (D_MODEL, D_MODEL)), "bv": jnp.zeros((1, D_MODEL), jnp.float32),
            "wo": dense(lk[3], (D_MODEL, D_MODEL)), "bo": jnp.zeros((1, D_MODEL), jnp.float32),
            "w1": dense(lk[4], (D_MODEL, D_FF)),    "b1": jnp.zeros((1, D_FF), jnp.float32),
            "w2": dense(lk[5], (D_FF, D_MODEL)),    "b2": jnp.zeros((1, D_MODEL), jnp.float32),
            "ln1_g": jnp.ones((1, D_MODEL), jnp.float32), "ln1_b": jnp.zeros((1, D_MODEL), jnp.float32),
            "ln2_g": jnp.ones((1, D_MODEL), jnp.float32), "ln2_b": jnp.zeros((1, D_MODEL), jnp.float32),
        })
    return params


def pack_params(params):
    """Host-side repack into 2 lane-dense slabs (one DMA each)."""
    def pad_to(w, rows, cols=LANE):
        r, c = w.shape
        return jnp.pad(w, ((0, rows - r), (0, cols - c)))

    wrows, vrows = [], []
    for lp in params["layers"]:
        wqkv = jnp.concatenate([lp["wq"], lp["wk"], lp["wv"]], axis=1)          # (32, 96)
        wrows += [pad_to(wqkv, D_MODEL),            # fused QKV, cols 96:128 zero
                  pad_to(lp["wo"], D_MODEL),        # out projection
                  pad_to(lp["w1"], D_MODEL),        # FFN up, cols 64:128 zero
                  pad_to(lp["w2"], VPAD)]           # FFN down, natural orientation, rows 64:128 zero
        bqkv = jnp.concatenate([lp["bq"], lp["bk"], lp["bv"]], axis=1)          # (1, 96)
        vrows += [pad_to(bqkv, 1), pad_to(lp["bo"], 1), pad_to(lp["b1"], 1),
                  pad_to(lp["b2"], 1), pad_to(lp["ln1_g"], 1), pad_to(lp["ln1_b"], 1),
                  pad_to(lp["ln2_g"], 1), pad_to(lp["ln2_b"], 1)]
    wrows.append(pad_to(params["lr_w"], D_MODEL))   # (32,128), cols 16:128 zero
    vrows.append(pad_to(params["lr_b"], 1))         # (1,128)

    w_slab = jnp.concatenate(wrows, axis=0).astype(jnp.bfloat16)                # (480,128)
    v_slab = jnp.concatenate(vrows, axis=0).astype(jnp.float32)                 # (17,128)
    v_slab = jnp.pad(v_slab, ((0, (-v_slab.shape[0]) % 8), (0, 0)))             # (24,128)
    return w_slab, v_slab


# ----------------------------- forward glue ----------------------------------
def tagger_forward(src, params, w_slab, v_slab):
    # TODO(synk): embedding gather + sinusoidal pos-enc stay in plain XLA glue; an
    # in-kernel dynamic gather is not worth it for 16 tokens. Dropout omitted (eval).
    x = params["embedding"][src] * math.sqrt(D_MODEL)            # (B, S, D)
    x = x + positional_encoding(S, D_MODEL)[None, :, :]
    x_flat = x.reshape(B * S, D_MODEL).astype(jnp.float32)       # batch folded into M
    out_pad = tagger_pallas(x_flat, w_slab, v_slab)              # (B*S, 128)
    return out_pad.reshape(B, S, VPAD)[:, :, :TGT_VOCAB]         # (B, S, V) log-probs


# ----------------------------- main ------------------------------------------
if __name__ == "__main__":
    key = jax.random.PRNGKey(0)
    pkey, skey = jax.random.split(key)
    params = init_params(pkey)
    w_slab, v_slab = pack_params(params)
    assert w_slab.shape == (W_ROWS, LANE) and v_slab.shape == (24, LANE)

    src = jax.random.randint(skey, (B, S), 0, SRC_VOCAB)         # token ids

    out = tagger_forward(src, params, w_slab, v_slab)
    out = jax.block_until_ready(out)

    assert out.shape == (B, S, TGT_VOCAB)
    # log_softmax over dim=1 (sequence axis): exp sums to 1 along axis=1.
    sums = jnp.sum(jnp.exp(out), axis=1)
    assert bool(jnp.all(jnp.abs(sums - 1.0) < 1e-3))
    assert bool(jnp.all(jnp.isfinite(out)))
    print("KERNEL_OK")
</pallas_src>

<mosaic_0001>
module attributes {stable_mosaic.version = 11 : i64} {
  func.func @tagger_kernel(%arg0: memref<16x32xf32, #tpu.memory_space<vmem>>, %arg1: memref<480x128xbf16, #tpu.memory_space<vmem>>, %arg2: memref<24x128xf32, #tpu.memory_space<vmem>>, %arg3: memref<16x128xf32, #tpu.memory_space<vmem>>) attributes {dimension_semantics = [], scalar_prefetch = 0 : i64, scratch_operands = 0 : i64, tpu.core_type = #tpu.core_type<tc>} {
    %c0 = arith.constant 0 : index
    %c0_0 = arith.constant 0 : index
    %0 = vector.load %arg0[%c0, %c0_0] : memref<16x32xf32, #tpu.memory_space<vmem>>, vector<16x32xf32>
    %c0_1 = arith.constant 0 : index
    %c0_2 = arith.constant 0 : index
    %1 = vector.load %arg1[%c0_1, %c0_2] : memref<480x128xbf16, #tpu.memory_space<vmem>>, vector<32x128xbf16>
    %c32 = arith.constant 32 : index
    %c0_3 = arith.constant 0 : index
    %2 = vector.load %arg1[%c32, %c0_3] : memref<480x128xbf16, #tpu.memory_space<vmem>>, vector<32x32xbf16>
    %c64 = arith.constant 64 : index
    %c0_4 = arith.constant 0 : index
    %3 = vector.load %arg1[%c64, %c0_4] : memref<480x128xbf16, #tpu.memory_space<vmem>>, vector<32x128xbf16>
    %c96 = arith.constant 96 : index
    %c0_5 = arith.constant 0 : index
    %4 = vector.load %arg1[%c96, %c0_5] : memref<480x128xbf16, #tpu.memory_space<vmem>>, vector<128x32xbf16>
    %c0_6 = arith.constant 0 : index
    %c0_7 = arith.constant 0 : index
    %5 = vector.load %arg2[%c0_6, %c0_7] : memref<24x128xf32, #tpu.memory_space<vmem>>, vector<1x128xf32>
    %c1 = arith.constant 1 : index
    %c0_8 = arith.constant 0 : index
    %6 = vector.load %arg2[%c1, %c0_8] : memref<24x128xf32, #tpu.memory_space<vmem>>, vector<1x32xf32>
    %c2 = arith.constant 2 : index
    %c0_9 = arith.constant 0 : index
    %7 = vector.load %arg2[%c2, %c0_9] : memref<24x128xf32, #tpu.memory_space<vmem>>, vector<1x128xf32>
    %c3 = arith.constant 3 : index
    %c0_10 = arith.constant 0 : index
    %8 = vector.load %arg2[%c3, %c0_10] : memref<24x128xf32, #tpu.memory_space<vmem>>, vector<1x32xf32>
    %c4 = arith.constant 4 : index
    %c0_11 = arith.constant 0 : index
    %9 = vector.load %arg2[%c4, %c0_11] : memref<24x128xf32, #tpu.memory_space<vmem>>, vector<1x32xf32>
    %c5 = arith.constant 5 : index
    %c0_12 = arith.constant 0 : index
    %10 = vector.load %arg2[%c5, %c0_12] : memref<24x128xf32, #tpu.memory_space<vmem>>, vector<1x32xf32>
    %c6 = arith.constant 6 : index
    %c0_13 = arith.constant 0 : index
    %11 = vector.load %arg2[%c6, %c0_13] : memref<24x128xf32, #tpu.memory_space<vmem>>, vector<1x32xf32>
    %c7 = arith.constant 7 : index
    %c0_14 = arith.constant 0 : index
    %12 = vector.load %arg2[%c7, %c0_14] : memref<24x128xf32, #tpu.memory_space<vmem>>, vector<1x32xf32>
    %13 = arith.truncf %0 : vector<16x32xf32> to vector<16x32xbf16>
    %cst = arith.constant dense<0.000000e+00> : vector<16x128xf32>
    %14 = tpu.matmul %13, %1, %cst {dimension_numbers = #tpu.dot_dimension_numbers<[1], [0], [0], [1], [0, 0, 1, 1], [], []>} : vector<16x32xbf16>, vector<32x128xbf16>, vector<16x128xf32> -> vector<16x128xf32>
    %15 = vector.broadcast %5 : vector<1x128xf32> to vector<16x128xf32>
    %16 = arith.addf %14, %15 : vector<16x128xf32>
    %17 = vector.extract_strided_slice %16 {offsets = [0, 0], sizes = [8, 128], strides = [1, 1]} : vector<16x128xf32> to vector<8x128xf32>
    %18 = vector.extract_strided_slice %17 {offsets = [0, 0], sizes = [8, 8], strides = [1, 1]} : vector<8x128xf32> to vector<8x8xf32>
    %19 = vector.extract_strided_slice %17 {offsets = [0, 32], sizes = [8, 8], strides = [1, 1]} : vector<8x128xf32> to vector<8x8xf32>
    %20 = vector.extract_strided_slice %17 {offsets = [0, 64], sizes = [8, 8], strides = [1, 1]} : vector<8x128xf32> to vector<8x8xf32>
    %21 = arith.truncf %18 : vector<8x8xf32> to vector<8x8xbf16>
    %22 = arith.truncf %19 : vector<8x8xf32> to vector<8x8xbf16>
    %cst_15 = arith.constant dense<0.000000e+00> : vector<8x8xf32>
    %23 = tpu.matmul %21, %22, %cst_15 {dimension_numbers = #tpu.dot_dimension_numbers<[1], [1], [0], [0], [0, 0, 1, 0], [], []>} : vector<8x8xbf16>, vector<8x8xbf16>, vector<8x8xf32> -> vector<8x8xf32>
    %cst_16 = arith.constant 0.353553385 : f32
    %24 = vector.broadcast %cst_16 : f32 to vector<8x8xf32>
    %25 = arith.mulf %23, %24 : vector<8x8xf32>
    %26 = math.exp %25 : vector<8x8xf32>
    %cst_17 = arith.constant dense<0.000000e+00> : vector<8xf32>
    %27 = vector.multi_reduction <add>, %26, %cst_17 [1] : vector<8x8xf32> to vector<8xf32>
    %28 = vector.shape_cast %27 : vector<8xf32> to vector<8x1xf32>
    %29 = tpu.reciprocal %28 {approx = true} : vector<8x1xf32> -> vector<8x1xf32>
    %30 = vector.broadcast %29 : vector<8x1xf32> to vector<8x8xf32>
    %31 = arith.mulf %26, %30 : vector<8x8xf32>
    %32 = arith.truncf %31 : vector<8x8xf32> to vector<8x8xbf16>
    %33 = arith.truncf %20 : vector<8x8xf32> to vector<8x8xbf16>
    %cst_18 = arith.constant dense<0.000000e+00> : vector<8x8xf32>
    %34 = tpu.matmul %32, %33, %cst_18 {dimension_numbers = #tpu.dot_dimension_numbers<[1], [0], [0], [1], [0, 0, 1, 1], [], []>} : vector<8x8xbf16>, vector<8x8xbf16>, vector<8x8xf32> -> vector<8x8xf32>
    %35 = vector.extract_strided_slice %17 {offsets = [0, 8], sizes = [8, 8], strides = [1, 1]} : vector<8x128xf32> to vector<8x8xf32>
    %36 = vector.extract_strided_slice %17 {offsets = [0, 40], sizes = [8, 8], strides = [1, 1]} : vector<8x128xf32> to vector<8x8xf32>
    %37 = vector.extract_strided_slice %17 {offsets = [0, 72], sizes = [8, 8], strides = [1, 1]} : vector<8x128xf32> to vector<8x8xf32>
    %38 = arith.truncf %35 : vector<8x8xf32> to vector<8x8xbf16>
    %39 = arith.truncf %36 : vector<8x8xf32> to vector<8x8xbf16>
    %cst_19 = arith.constant dense<0.000000e+00> : vector<8x8xf32>
    %40 = tpu.matmul %38, %39, %cst_19 {dimension_numbers = #tpu.dot_dimension_numbers<[1], [1], [0], [0], [0, 0, 1, 0], [], []>} : vector<8x8xbf16>, vector<8x8xbf16>, vector<8x8xf32> -> vector<8x8xf32>
    %cst_20 = arith.constant 0.353553385 : f32
    %41 = vector.broadcast %cst_20 : f32 to vector<8x8xf32>
    %42 = arith.mulf %40, %41 : vector<8x8xf32>
    %43 = math.exp %42 : vector<8x8xf32>
    %cst_21 = arith.constant dense<0.000000e+00> : vector<8xf32>
    %44 = vector.multi_reduction <add>, %43, %cst_21 [1] : vector<8x8xf32> to vector<8xf32>
    %45 = vector.shape_cast %44 : vector<8xf32> to vector<8x1xf32>
    %46 = tpu.reciprocal %45 {approx = true} : vector<8x1xf32> -> vector<8x1xf32>
    %47 = vector.broadcast %46 : vector<8x1xf32> to vector<8x8xf32>
    %48 = arith.mulf %43, %47 : vector<8x8xf32>
    %49 = arith.truncf %48 : vector<8x8xf32> to vector<8x8xbf16>
    %50 = arith.truncf %37 : vector<8x8xf32> to vector<8x8xbf16>
    %cst_22 = arith.constant dense<0.000000e+00> : vector<8x8xf32>
    %51 = tpu.matmul %49, %50, %cst_22 {dimension_numbers = #tpu.dot_dimension_numbers<[1], [0], [0], [1], [0, 0, 1, 1], [], []>} : vector<8x8xbf16>, vector<8x8xbf16>, vector<8x8xf32> -> vector<8x8xf32>
    %52 = vector.extract_strided_slice %17 {offsets = [0, 16], sizes = [8, 8], strides = [1, 1]} : vector<8x128xf32> to vector<8x8xf32>
    %53 = vector.extract_strided_slice %17 {offsets = [0, 48], sizes = [8, 8], strides = [1, 1]} : vector<8x128xf32> to vector<8x8xf32>
    %54 = vector.extract_strided_slice %17 {offsets = [0, 80], sizes = [8, 8], strides = [1, 1]} : vector<8x128xf32> to vector<8x8xf32>
    %55 = arith.truncf %52 : vector<8x8xf32> to vector<8x8xbf16>
    %56 = arith.truncf %53 : vector<8x8xf32> to vector<8x8xbf16>
    %cst_23 = arith.constant dense<0.000000e+00> : vector<8x8xf32>
    %57 = tpu.matmul %55, %56, %cst_23 {dimension_numbers = #tpu.dot_dimension_numbers<[1], [1], [0], [0], [0, 0, 1, 0], [], []>} : vector<8x8xbf16>, vector<8x8xbf16>, vector<8x8xf32> -> vector<8x8xf32>
    %cst_24 = arith.constant 0.353553385 : f32
    %58 = vector.broadcast %cst_24 : f32 to vector<8x8xf32>
    %59 = arith.mulf %57, %58 : vector<8x8xf32>
    %60 = math.exp %59 : vector<8x8xf32>
    %cst_25 = arith.constant dense<0.000000e+00> : vector<8xf32>
    %61 = vector.multi_reduction <add>, %60, %cst_25 [1] : vector<8x8xf32> to vector<8xf32>
    %62 = vector.shape_cast %61 : vector<8xf32> to vector<8x1xf32>
    %63 = tpu.reciprocal %62 {approx = true} : vector<8x1xf32> -> vector<8x1xf32>
    %64 = vector.broadcast %63 : vector<8x1xf32> to vector<8x8xf32>
    %65 = arith.mulf %60, %64 : vector<8x8xf32>
    %66 = arith.truncf %65 : vector<8x8xf32> to vector<8x8xbf16>
    %67 = arith.truncf %54 : vector<8x8xf32> to vector<8x8xbf16>
    %cst_26 = arith.constant dense<0.000000e+00> : vector<8x8xf32>
    %68 = tpu.matmul %66, %67, %cst_26 {dimension_numbers = #tpu.dot_dimension_numbers<[1], [0], [0], [1], [0, 0, 1, 1], [], []>} : vector<8x8xbf16>, vector<8x8xbf16>, vector<8x8xf32> -> vector<8x8xf32>
    %69 = vector.extract_strided_slice %17 {offsets = [0, 24], sizes = [8, 8], strides = [1, 1]} : vector<8x128xf32> to vector<8x8xf32>
    %70 = vector.extract_strided_slice %17 {offsets = [0, 56], sizes = [8, 8], strides = [1, 1]} : vector<8x128xf32> to vector<8x8xf32>
    %71 = vector.extract_strided_slice %17 {offsets = [0, 88], sizes = [8, 8], strides = [1, 1]} : vector<8x128xf32> to vector<8x8xf32>
    %72 = arith.truncf %69 : vector<8x8xf32> to vector<8x8xbf16>
    %73 = arith.truncf %70 : vector<8x8xf32> to vector<8x8xbf16>
    %cst_27 = arith.constant dense<0.000000e+00> : vector<8x8xf32>
    %74 = tpu.matmul %72, %73, %cst_27 {dimension_numbers = #tpu.dot_dimension_numbers<[1], [1], [0], [0], [0, 0, 1, 0], [], []>} : vector<8x8xbf16>, vector<8x8xbf16>, vector<8x8xf32> -> vector<8x8xf32>
    %cst_28 = arith.constant 0.353553385 : f32
    %75 = vector.broadcast %cst_28 : f32 to vector<8x8xf32>
    %76 = arith.mulf %74, %75 : vector<8x8xf32>
    %77 = math.exp %76 : vector<8x8xf32>
    %cst_29 = arith.constant dense<0.000000e+00> : vector<8xf32>
    %78 = vector.multi_reduction <add>, %77, %cst_29 [1] : vector<8x8xf32> to vector<8xf32>
    %79 = vector.shape_cast %78 : vector<8xf32> to vector<8x1xf32>
    %80 = tpu.reciprocal %79 {approx = true} : vector<8x1xf32> -> vector<8x1xf32>
    %81 = vector.broadcast %80 : vector<8x1xf32> to vector<8x8xf32>
    %82 = arith.mulf %77, %81 : vector<8x8xf32>
    %83 = arith.truncf %82 : vector<8x8xf32> to vector<8x8xbf16>
    %84 = arith.truncf %71 : vector<8x8xf32> to vector<8x8xbf16>
    %cst_30 = arith.constant dense<0.000000e+00> : vector<8x8xf32>
    %85 = tpu.matmul %83, %84, %cst_30 {dimension_numbers = #tpu.dot_dimension_numbers<[1], [0], [0], [1], [0, 0, 1, 1], [], []>} : vector<8x8xbf16>, vector<8x8xbf16>, vector<8x8xf32> -> vector<8x8xf32>
    %86 = tpu.concatenate %34, %51, %68, %85 in 1 : vector<8x8xf32>, vector<8x8xf32>, vector<8x8xf32>, vector<8x8xf32> -> vector<8x32xf32>
    %87 = vector.extract_strided_slice %16 {offsets = [8, 0], sizes = [8, 128], strides = [1, 1]} : vector<16x128xf32> to vector<8x128xf32>
    %88 = vector.extract_strided_slice %87 {offsets = [0, 0], sizes = [8, 8], strides = [1, 1]} : vector<8x128xf32> to vector<8x8xf32>
    %89 = vector.extract_strided_slice %87 {offsets = [0, 32], sizes = [8, 8], strides = [1, 1]} : vector<8x128xf32> to vector<8x8xf32>
    %90 = vector.extract_strided_slice %87 {offsets = [0, 64], sizes = [8, 8], strides = [1, 1]} : vector<8x128xf32> to vector<8x8xf32>
    %91 = arith.truncf %88 : vector<8x8xf32> to vector<8x8xbf16>
    %92 = arith.truncf %89 : vector<8x8xf32> to vector<8x8xbf16>
    %cst_31 = arith.constant dense<0.000000e+00> : vector<8x8xf32>
    %93 = tpu.matmul %91, %92, %cst_31 {dimension_numbers = #tpu.dot_dimension_numbers<[1], [1], [0], [0], [0, 0, 1, 0], [], []>} : vector<8x8xbf16>, vector<8x8xbf16>, vector<8x8xf32> -> vector<8x8xf32>
    %cst_32 = arith.constant 0.353553385 : f32
    %94 = vector.broadcast %cst_32 : f32 to vector<8x8xf32>
    %95 = arith.mulf %93, %94 : vector<8x8xf32>
    %96 = math.exp %95 : vector<8x8xf32>
    %cst_33 = arith.constant dense<0.000000e+00> : vector<8xf32>
    %97 = vector.multi_reduction <add>, %96, %cst_33 [1] : vector<8x8xf32> to vector<8xf32>
    %98 = vector.shape_cast %97 : vector<8xf32> to vector<8x1xf32>
    %99 = tpu.reciprocal %98 {approx = true} : vector<8x1xf32> -> vector<8x1xf32>
    %100 = vector.broadcast %99 : vector<8x1xf32> to vector<8x8xf32>
    %101 = arith.mulf %96, %100 : vector<8x8xf32>
    %102 = arith.truncf %101 : vector<8x8xf32> to vector<8x8xbf16>
    %103 = arith.truncf %90 : vector<8x8xf32> to vector<8x8xbf16>
    %cst_34 = arith.constant dense<0.000000e+00> : vector<8x8xf32>
    %104 = tpu.matmul %102, %103, %cst_34 {dimension_numbers = #tpu.dot_dimension_numbers<[1], [0], [0], [1], [0, 0, 1, 1], [], []>} : vector<8x8xbf16>, vector<8x8xbf16>, vector<8x8xf32> -> vector<8x8xf32>
    %105 = vector.extract_strided_slice %87 {offsets = [0, 8], sizes = [8, 8], strides = [1, 1]} : vector<8x128xf32> to vector<8x8xf32>
    %106 = vector.extract_strided_slice %87 {offsets = [0, 40], sizes = [8, 8], strides = [1, 1]} : vector<8x128xf32> to vector<8x8xf32>
    %107 = vector.extract_strided_slice %87 {offsets = [0, 72], sizes = [8, 8], strides = [1, 1]} : vector<8x128xf32> to vector<8x8xf32>
    %108 = arith.truncf %105 : vector<8x8xf32> to vector<8x8xbf16>
    %109 = arith.truncf %106 : vector<8x8xf32> to vector<8x8xbf16>
    %cst_35 = arith.constant dense<0.000000e+00> : vector<8x8xf32>
    %110 = tpu.matmul %108, %109, %cst_35 {dimension_numbers = #tpu.dot_dimension_numbers<[1], [1], [0], [0], [0, 0, 1, 0], [], []>} : vector<8x8xbf16>, vector<8x8xbf16>, vector<8x8xf32> -> vector<8x8xf32>
    %cst_36 = arith.constant 0.353553385 : f32
    %111 = vector.broadcast %cst_36 : f32 to vector<8x8xf32>
    %112 = arith.mulf %110, %111 : vector<8x8xf32>
    %113 = math.exp %112 : vector<8x8xf32>
    %cst_37 = arith.constant dense<0.000000e+00> : vector<8xf32>
    %114 = vector.multi_reduction <add>, %113, %cst_37 [1] : vector<8x8xf32> to vector<8xf32>
    %115 = vector.shape_cast %114 : vector<8xf32> to vector<8x1xf32>
    %116 = tpu.reciprocal %115 {approx = true} : vector<8x1xf32> -> vector<8x1xf32>
    %117 = vector.broadcast %116 : vector<8x1xf32> to vector<8x8xf32>
    %118 = arith.mulf %113, %117 : vector<8x8xf32>
    %119 = arith.truncf %118 : vector<8x8xf32> to vector<8x8xbf16>
    %120 = arith.truncf %107 : vector<8x8xf32> to vector<8x8xbf16>
    %cst_38 = arith.constant dense<0.000000e+00> : vector<8x8xf32>
    %121 = tpu.matmul %119, %120, %cst_38 {dimension_numbers = #tpu.dot_dimension_numbers<[1], [0], [0], [1], [0, 0, 1, 1], [], []>} : vector<8x8xbf16>, vector<8x8xbf16>, vector<8x8xf32> -> vector<8x8xf32>
    %122 = vector.extract_strided_slice %87 {offsets = [0, 16], sizes = [8, 8], strides = [1, 1]} : vector<8x128xf32> to vector<8x8xf32>
    %123 = vector.extract_strided_slice %87 {offsets = [0, 48], sizes = [8, 8], strides = [1, 1]} : vector<8x128xf32> to vector<8x8xf32>
    %124 = vector.extract_strided_slice %87 {offsets = [0, 80], sizes = [8, 8], strides = [1, 1]} : vector<8x128xf32> to vector<8x8xf32>
    %125 = arith.truncf %122 : vector<8x8xf32> to vector<8x8xbf16>
    %126 = arith.truncf %123 : vector<8x8xf32> to vector<8x8xbf16>
    %cst_39 = arith.constant dense<0.000000e+00> : vector<8x8xf32>
    %127 = tpu.matmul %125, %126, %cst_39 {dimension_numbers = #tpu.dot_dimension_numbers<[1], [1], [0], [0], [0, 0, 1, 0], [], []>} : vector<8x8xbf16>, vector<8x8xbf16>, vector<8x8xf32> -> vector<8x8xf32>
    %cst_40 = arith.constant 0.353553385 : f32
    %128 = vector.broadcast %cst_40 : f32 to vector<8x8xf32>
    %129 = arith.mulf %127, %128 : vector<8x8xf32>
    %130 = math.exp %129 : vector<8x8xf32>
    %cst_41 = arith.constant dense<0.000000e+00> : vector<8xf32>
    %131 = vector.multi_reduction <add>, %130, %cst_41 [1] : vector<8x8xf32> to vector<8xf32>
    %132 = vector.shape_cast %131 : vector<8xf32> to vector<8x1xf32>
    %133 = tpu.reciprocal %132 {approx = true} : vector<8x1xf32> -> vector<8x1xf32>
    %134 = vector.broadcast %133 : vector<8x1xf32> to vector<8x8xf32>
    %135 = arith.mulf %130, %134 : vector<8x8xf32>
    %136 = arith.truncf %135 : vector<8x8xf32> to vector<8x8xbf16>
    %137 = arith.truncf %124 : vector<8x8xf32> to vector<8x8xbf16>
    %cst_42 = arith.constant dense<0.000000e+00> : vector<8x8xf32>
    %138 = tpu.matmul %136, %137, %cst_42 {dimension_numbers = #tpu.dot_dimension_numbers<[1], [0], [0], [1], [0, 0, 1, 1], [], []>} : vector<8x8xbf16>, vector<8x8xbf16>, vector<8x8xf32> -> vector<8x8xf32>
    %139 = vector.extract_strided_slice %87 {offsets = [0, 24], sizes = [8, 8], strides = [1, 1]} : vector<8x128xf32> to vector<8x8xf32>
    %140 = vector.extract_strided_slice %87 {offsets = [0, 56], sizes = [8, 8], strides = [1, 1]} : vector<8x128xf32> to vector<8x8xf32>
    %141 = vector.extract_strided_slice %87 {offsets = [0, 88], sizes = [8, 8], strides = [1, 1]} : vector<8x128xf32> to vector<8x8xf32>
    %142 = arith.truncf %139 : vector<8x8xf32> to vector<8x8xbf16>
    %143 = arith.truncf %140 : vector<8x8xf32> to vector<8x8xbf16>
    %cst_43 = arith.constant dense<0.000000e+00> : vector<8x8xf32>
    %144 = tpu.matmul %142, %143, %cst_43 {dimension_numbers = #tpu.dot_dimension_numbers<[1], [1], [0], [0], [0, 0, 1, 0], [], []>} : vector<8x8xbf16>, vector<8x8xbf16>, vector<8x8xf32> -> vector<8x8xf32>
    %cst_44 = arith.constant 0.353553385 : f32
    %145 = vector.broadcast %cst_44 : f32 to vector<8x8xf32>
    %146 = arith.mulf %144, %145 : vector<8x8xf32>
    %147 = math.exp %146 : vector<8x8xf32>
    %cst_45 = arith.constant dense<0.000000e+00> : vector<8xf32>
    %148 = vector.multi_reduction <add>, %147, %cst_45 [1] : vector<8x8xf32> to vector<8xf32>
    %149 = vector.shape_cast %148 : vector<8xf32> to vector<8x1xf32>
    %150 = tpu.reciprocal %149 {approx = true} : vector<8x1xf32> -> vector<8x1xf32>
    %151 = vector.broadcast %150 : vector<8x1xf32> to vector<8x8xf32>
    %152 = arith.mulf %147, %151 : vector<8x8xf32>
    %153 = arith.truncf %152 : vector<8x8xf32> to vector<8x8xbf16>
    %154 = arith.truncf %141 : vector<8x8xf32> to vector<8x8xbf16>
    %cst_46 = arith.constant dense<0.000000e+00> : vector<8x8xf32>
    %155 = tpu.matmul %153, %154, %cst_46 {dimension_numbers = #tpu.dot_dimension_numbers<[1], [0], [0], [1], [0, 0, 1, 1], [], []>} : vector<8x8xbf16>, vector<8x8xbf16>, vector<8x8xf32> -> vector<8x8xf32>
    %156 = tpu.concatenate %104, %121, %138, %155 in 1 : vector<8x8xf32>, vector<8x8xf32>, vector<8x8xf32>, vector<8x8xf32> -> vector<8x32xf32>
    %157 = tpu.concatenate %86, %156 in 0 : vector<8x32xf32>, vector<8x32xf32> -> vector<16x32xf32>
    %158 = arith.truncf %157 : vector<16x32xf32> to vector<16x32xbf16>
    %cst_47 = arith.constant dense<0.000000e+00> : vector<16x32xf32>
    %159 = tpu.matmul %158, %2, %cst_47 {dimension_numbers = #tpu.dot_dimension_numbers<[1], [0], [0], [1], [0, 0, 1, 1], [], []>} : vector<16x32xbf16>, vector<32x32xbf16>, vector<16x32xf32> -> vector<16x32xf32>
    %160 = vector.broadcast %6 : vector<1x32xf32> to vector<16x32xf32>
    %161 = arith.addf %159, %160 : vector<16x32xf32>
    %162 = arith.addf %0, %161 : vector<16x32xf32>
    %cst_48 = arith.constant dense<0.000000e+00> : vector<16xf32>
    %163 = vector.multi_reduction <add>, %162, %cst_48 [1] : vector<16x32xf32> to vector<16xf32>
    %164 = vector.shape_cast %163 : vector<16xf32> to vector<16x1xf32>
    %cst_49 = arith.constant 3.200000e+01 : f32
    %165 = vector.broadcast %cst_49 : f32 to vector<16x1xf32>
    %166 = arith.divf %164, %165 : vector<16x1xf32>
    %167 = vector.broadcast %166 : vector<16x1xf32> to vector<16x32xf32>
    %168 = arith.subf %162, %167 : vector<16x32xf32>
    %169 = arith.mulf %168, %168 : vector<16x32xf32>
    %cst_50 = arith.constant dense<0.000000e+00> : vector<16xf32>
    %170 = vector.multi_reduction <add>, %169, %cst_50 [1] : vector<16x32xf32> to vector<16xf32>
    %171 = vector.shape_cast %170 : vector<16xf32> to vector<16x1xf32>
    %cst_51 = arith.constant 3.200000e+01 : f32
    %172 = vector.broadcast %cst_51 : f32 to vector<16x1xf32>
    %173 = arith.divf %171, %172 : vector<16x1xf32>
    %174 = vector.broadcast %166 : vector<16x1xf32> to vector<16x32xf32>
    %175 = arith.subf %162, %174 : vector<16x32xf32>
    %cst_52 = arith.constant 9.99999974E-6 : f32
    %176 = vector.broadcast %cst_52 : f32 to vector<16x1xf32>
    %177 = arith.addf %173, %176 : vector<16x1xf32>
    %178 = math.rsqrt %177 : vector<16x1xf32>
    %179 = vector.broadcast %178 : vector<16x1xf32> to vector<16x32xf32>
    %180 = arith.mulf %175, %179 : vector<16x32xf32>
    %181 = vector.broadcast %9 : vector<1x32xf32> to vector<16x32xf32>
    %182 = arith.mulf %180, %181 : vector<16x32xf32>
    %183 = vector.broadcast %10 : vector<1x32xf32> to vector<16x32xf32>
    %184 = arith.addf %182, %183 : vector<16x32xf32>
    %185 = arith.truncf %184 : vector<16x32xf32> to vector<16x32xbf16>
    %cst_53 = arith.constant dense<0.000000e+00> : vector<16x128xf32>
    %186 = tpu.matmul %185, %3, %cst_53 {dimension_numbers = #tpu.dot_dimension_numbers<[1], [0], [0], [1], [0, 0, 1, 1], [], []>} : vector<16x32xbf16>, vector<32x128xbf16>, vector<16x128xf32> -> vector<16x128xf32>
    %187 = vector.broadcast %7 : vector<1x128xf32> to vector<16x128xf32>
    %188 = arith.addf %186, %187 : vector<16x128xf32>
    %cst_54 = arith.constant 0.000000e+00 : f32
    %189 = vector.broadcast %cst_54 : f32 to vector<16x128xf32>
    %190 = arith.maximumf %188, %189 : vector<16x128xf32>
    %191 = arith.truncf %190 : vector<16x128xf32> to vector<16x128xbf16>
    %cst_55 = arith.constant dense<0.000000e+00> : vector<16x32xf32>
    %192 = tpu.matmul %191, %4, %cst_55 {dimension_numbers = #tpu.dot_dimension_numbers<[1], [0], [0], [1], [0, 0, 1, 1], [], []>} : vector<16x128xbf16>, vector<128x32xbf16>, vector<16x32xf32> -> vector<16x32xf32>
    %193 = vector.broadcast %8 : vector<1x32xf32> to vector<16x32xf32>
    %194 = arith.addf %192, %193 : vector<16x32xf32>
    %195 = arith.addf %184, %194 : vector<16x32xf32>
    %cst_56 = arith.constant dense<0.000000e+00> : vector<16xf32>
    %196 = vector.multi_reduction <add>, %195, %cst_56 [1] : vector<16x32xf32> to vector<16xf32>
    %197 = vector.shape_cast %196 : vector<16xf32> to vector<16x1xf32>
    %cst_57 = arith.constant 3.200000e+01 : f32
    %198 = vector.broadcast %cst_57 : f32 to vector<16x1xf32>
    %199 = arith.divf %197, %198 : vector<16x1xf32>
    %200 = vector.broadcast %199 : vector<16x1xf32> to vector<16x32xf32>
    %201 = arith.subf %195, %200 : vector<16x32xf32>
    %202 = arith.mulf %201, %201 : vector<16x32xf32>
    %cst_58 = arith.constant dense<0.000000e+00> : vector<16xf32>
    %203 = vector.multi_reduction <add>, %202, %cst_58 [1] : vector<16x32xf32> to vector<16xf32>
    %204 = vector.shape_cast %203 : vector<16xf32> to vector<16x1xf32>
    %cst_59 = arith.constant 3.200000e+01 : f32
    %205 = vector.broadcast %cst_59 : f32 to vector<16x1xf32>
    %206 = arith.divf %204, %205 : vector<16x1xf32>
    %207 = vector.broadcast %199 : vector<16x1xf32> to vector<16x32xf32>
    %208 = arith.subf %195, %207 : vector<16x32xf32>
    %cst_60 = arith.constant 9.99999974E-6 : f32
    %209 = vector.broadcast %cst_60 : f32 to vector<16x1xf32>
    %210 = arith.addf %206, %209 : vector<16x1xf32>
    %211 = math.rsqrt %210 : vector<16x1xf32>
    %212 = vector.broadcast %211 : vector<16x1xf32> to vector<16x32xf32>
    %213 = arith.mulf %208, %212 : vector<16x32xf32>
    %214 = vector.broadcast %11 : vector<1x32xf32> to vector<16x32xf32>
    %215 = arith.mulf %213, %214 : vector<16x32xf32>
    %216 = vector.broadcast %12 : vector<1x32xf32> to vector<16x32xf32>
    %217 = arith.addf %215, %216 : vector<16x32xf32>
    %c224 = arith.constant 224 : index
    %c0_61 = arith.constant 0 : index
    %218 = vector.load %arg1[%c224, %c0_61] : memref<480x128xbf16, #tpu.memory_space<vmem>>, vector<32x128xbf16>
    %c256 = arith.constant 256 : index
    %c0_62 = arith.constant 0 : index
    %219 = vector.load %arg1[%c256, %c0_62] : memref<480x128xbf16, #tpu.memory_space<vmem>>, vector<32x32xbf16>
    %c288 = arith.constant 288 : index
    %c0_63 = arith.constant 0 : index
    %220 = vector.load %arg1[%c288, %c0_63] : memref<480x128xbf16, #tpu.memory_space<vmem>>, vector<32x128xbf16>
    %c320 = arith.constant 320 : index
    %c0_64 = arith.constant 0 : index
    %221 = vector.load %arg1[%c320, %c0_64] : memref<480x128xbf16, #tpu.memory_space<vmem>>, vector<128x32xbf16>
    %c8 = arith.constant 8 : index
    %c0_65 = arith.constant 0 : index
    %222 = vector.load %arg2[%c8, %c0_65] : memref<24x128xf32, #tpu.memory_space<vmem>>, vector<1x128xf32>
    %c9 = arith.constant 9 : index
    %c0_66 = arith.constant 0 : index
    %223 = vector.load %arg2[%c9, %c0_66] : memref<24x128xf32, #tpu.memory_space<vmem>>, vector<1x32xf32>
    %c10 = arith.constant 10 : index
    %c0_67 = arith.constant 0 : index
    %224 = vector.load %arg2[%c10, %c0_67] : memref<24x128xf32, #tpu.memory_space<vmem>>, vector<1x128xf32>
    %c11 = arith.constant 11 : index
    %c0_68 = arith.constant 0 : index
    %225 = vector.load %arg2[%c11, %c0_68] : memref<24x128xf32, #tpu.memory_space<vmem>>, vector<1x32xf32>
    %c12 = arith.constant 12 : index
    %c0_69 = arith.constant 0 : index
    %226 = vector.load %arg2[%c12, %c0_69] : memref<24x128xf32, #tpu.memory_space<vmem>>, vector<1x32xf32>
    %c13 = arith.constant 13 : index
    %c0_70 = arith.constant 0 : index
    %227 = vector.load %arg2[%c13, %c0_70] : memref<24x128xf32, #tpu.memory_space<vmem>>, vector<1x32xf32>
    %c14 = arith.constant 14 : index
    %c0_71 = arith.constant 0 : index
    %228 = vector.load %arg2[%c14, %c0_71] : memref<24x128xf32, #tpu.memory_space<vmem>>, vector<1x32xf32>
    %c15 = arith.constant 15 : index
    %c0_72 = arith.constant 0 : index
    %229 = vector.load %arg2[%c15, %c0_72] : memref<24x128xf32, #tpu.memory_space<vmem>>, vector<1x32xf32>
    %230 = arith.truncf %217 : vector<16x32xf32> to vector<16x32xbf16>
    %cst_73 = arith.constant dense<0.000000e+00> : vector<16x128xf32>
    %231 = tpu.matmul %230, %218, %cst_73 {dimension_numbers = #tpu.dot_dimension_numbers<[1], [0], [0], [1], [0, 0, 1, 1], [], []>} : vector<16x32xbf16>, vector<32x128xbf16>, vector<16x128xf32> -> vector<16x128xf32>
    %232 = vector.broadcast %222 : vector<1x128xf32> to vector<16x128xf32>
    %233 = arith.addf %231, %232 : vector<16x128xf32>
    %234 = vector.extract_strided_slice %233 {offsets = [0, 0], sizes = [8, 128], strides = [1, 1]} : vector<16x128xf32> to vector<8x128xf32>
    %235 = vector.extract_strided_slice %234 {offsets = [0, 0], sizes = [8, 8], strides = [1, 1]} : vector<8x128xf32> to vector<8x8xf32>
    %236 = vector.extract_strided_slice %234 {offsets = [0, 32], sizes = [8, 8], strides = [1, 1]} : vector<8x128xf32> to vector<8x8xf32>
    %237 = vector.extract_strided_slice %234 {offsets = [0, 64], sizes = [8, 8], strides = [1, 1]} : vector<8x128xf32> to vector<8x8xf32>
    %238 = arith.truncf %235 : vector<8x8xf32> to vector<8x8xbf16>
    %239 = arith.truncf %236 : vector<8x8xf32> to vector<8x8xbf16>
    %cst_74 = arith.constant dense<0.000000e+00> : vector<8x8xf32>
    %240 = tpu.matmul %238, %239, %cst_74 {dimension_numbers = #tpu.dot_dimension_numbers<[1], [1], [0], [0], [0, 0, 1, 0], [], []>} : vector<8x8xbf16>, vector<8x8xbf16>, vector<8x8xf32> -> vector<8x8xf32>
    %cst_75 = arith.constant 0.353553385 : f32
    %241 = vector.broadcast %cst_75 : f32 to vector<8x8xf32>
    %242 = arith.mulf %240, %241 : vector<8x8xf32>
    %243 = math.exp %242 : vector<8x8xf32>
    %cst_76 = arith.constant dense<0.000000e+00> : vector<8xf32>
    %244 = vector.multi_reduction <add>, %243, %cst_76 [1] : vector<8x8xf32> to vector<8xf32>
    %245 = vector.shape_cast %244 : vector<8xf32> to vector<8x1xf32>
    %246 = tpu.reciprocal %245 {approx = true} : vector<8x1xf32> -> vector<8x1xf32>
    %247 = vector.broadcast %246 : vector<8x1xf32> to vector<8x8xf32>
    %248 = arith.mulf %243, %247 : vector<8x8xf32>
    %249 = arith.truncf %248 : vector<8x8xf32> to vector<8x8xbf16>
    %250 = arith.truncf %237 : vector<8x8xf32> to vector<8x8xbf16>
    %cst_77 = arith.constant dense<0.000000e+00> : vector<8x8xf32>
    %251 = tpu.matmul %249, %250, %cst_77 {dimension_numbers = #tpu.dot_dimension_numbers<[1], [0], [0], [1], [0, 0, 1, 1], [], []>} : vector<8x8xbf16>, vector<8x8xbf16>, vector<8x8xf32> -> vector<8x8xf32>
    %252 = vector.extract_strided_slice %234 {offsets = [0, 8], sizes = [8, 8], strides = [1, 1]} : vector<8x128xf32> to vector<8x8xf32>
    %253 = vector.extract_strided_slice %234 {offsets = [0, 40], sizes = [8, 8], strides = [1, 1]} : vector<8x128xf32> to vector<8x8xf32>
    %254 = vector.extract_strided_slice %234 {offsets = [0, 72], sizes = [8, 8], strides = [1, 1]} : vector<8x128xf32> to vector<8x8xf32>
    %255 = arith.truncf %252 : vector<8x8xf32> to vector<8x8xbf16>
    %256 = arith.truncf %253 : vector<8x8xf32> to vector<8x8xbf16>
    %cst_78 = arith.constant dense<0.000000e+00> : vector<8x8xf32>
    %257 = tpu.matmul %255, %256, %cst_78 {dimension_numbers = #tpu.dot_dimension_numbers<[1], [1], [0], [0], [0, 0, 1, 0], [], []>} : vector<8x8xbf16>, vector<8x8xbf16>, vector<8x8xf32> -> vector<8x8xf32>
    %cst_79 = arith.constant 0.353553385 : f32
    %258 = vector.broadcast %cst_79 : f32 to vector<8x8xf32>
    %259 = arith.mulf %257, %258 : vector<8x8xf32>
    %260 = math.exp %259 : vector<8x8xf32>
    %cst_80 = arith.constant dense<0.000000e+00> : vector<8xf32>
    %261 = vector.multi_reduction <add>, %260, %cst_80 [1] : vector<8x8xf32> to vector<8xf32>
    %262 = vector.shape_cast %261 : vector<8xf32> to vector<8x1xf32>
    %263 = tpu.reciprocal %262 {approx = true} : vector<8x1xf32> -> vector<8x1xf32>
    %264 = vector.broadcast %263 : vector<8x1xf32> to vector<8x8xf32>
    %265 = arith.mulf %260, %264 : vector<8x8xf32>
    %266 = arith.truncf %265 : vector<8x8xf32> to vector<8x8xbf16>
    %267 = arith.truncf %254 : vector<8x8xf32> to vector<8x8xbf16>
    %cst_81 = arith.constant dense<0.000000e+00> : vector<8x8xf32>
    %268 = tpu.matmul %266, %267, %cst_81 {dimension_numbers = #tpu.dot_dimension_numbers<[1], [0], [0], [1], [0, 0, 1, 1], [], []>} : vector<8x8xbf16>, vector<8x8xbf16>, vector<8x8xf32> -> vector<8x8xf32>
    %269 = vector.extract_strided_slice %234 {offsets = [0, 16], sizes = [8, 8], strides = [1, 1]} : vector<8x128xf32> to vector<8x8xf32>
    %270 = vector.extract_strided_slice %234 {offsets = [0, 48], sizes = [8, 8], strides = [1, 1]} : vector<8x128xf32> to vector<8x8xf32>
    %271 = vector.extract_strided_slice %234 {offsets = [0, 80], sizes = [8, 8], strides = [1, 1]} : vector<8x128xf32> to vector<8x8xf32>
    %272 = arith.truncf %269 : vector<8x8xf32> to vector<8x8xbf16>
    %273 = arith.truncf %270 : vector<8x8xf32> to vector<8x8xbf16>
    %cst_82 = arith.constant dense<0.000000e+00> : vector<8x8xf32>
    %274 = tpu.matmul %272, %273, %cst_82 {dimension_numbers = #tpu.dot_dimension_numbers<[1], [1], [0], [0], [0, 0, 1, 0], [], []>} : vector<8x8xbf16>, vector<8x8xbf16>, vector<8x8xf32> -> vector<8x8xf32>
    %cst_83 = arith.constant 0.353553385 : f32
    %275 = vector.broadcast %cst_83 : f32 to vector<8x8xf32>
    %276 = arith.mulf %274, %275 : vector<8x8xf32>
    %277 = math.exp %276 : vector<8x8xf32>
    %cst_84 = arith.constant dense<0.000000e+00> : vector<8xf32>
    %278 = vector.multi_reduction <add>, %277, %cst_84 [1] : vector<8x8xf32> to vector<8xf32>
    %279 = vector.shape_cast %278 : vector<8xf32> to vector<8x1xf32>
    %280 = tpu.reciprocal %279 {approx = true} : vector<8x1xf32> -> vector<8x1xf32>
    %281 = vector.broadcast %280 : vector<8x1xf32> to vector<8x8xf32>
    %282 = arith.mulf %277, %281 : vector<8x8xf32>
    %283 = arith.truncf %282 : vector<8x8xf32> to vector<8x8xbf16>
    %284 = arith.truncf %271 : vector<8x8xf32> to vector<8x8xbf16>
    %cst_85 = arith.constant dense<0.000000e+00> : vector<8x8xf32>
    %285 = tpu.matmul %283, %284, %cst_85 {dimension_numbers = #tpu.dot_dimension_numbers<[1], [0], [0], [1], [0, 0, 1, 1], [], []>} : vector<8x8xbf16>, vector<8x8xbf16>, vector<8x8xf32> -> vector<8x8xf32>
    %286 = vector.extract_strided_slice %234 {offsets = [0, 24], sizes = [8, 8], strides = [1, 1]} : vector<8x128xf32> to vector<8x8xf32>
    %287 = vector.extract_strided_slice %234 {offsets = [0, 56], sizes = [8, 8], strides = [1, 1]} : vector<8x128xf32> to vector<8x8xf32>
    %288 = vector.extract_strided_slice %234 {offsets = [0, 88], sizes = [8, 8], strides = [1, 1]} : vector<8x128xf32> to vector<8x8xf32>
    %289 = arith.truncf %286 : vector<8x8xf32> to vector<8x8xbf16>
    %290 = arith.truncf %287 : vector<8x8xf32> to vector<8x8xbf16>
    %cst_86 = arith.constant dense<0.000000e+00> : vector<8x8xf32>
    %291 = tpu.matmul %289, %290, %cst_86 {dimension_numbers = #tpu.dot_dimension_numbers<[1], [1], [0], [0], [0, 0, 1, 0], [], []>} : vector<8x8xbf16>, vector<8x8xbf16>, vector<8x8xf32> -> vector<8x8xf32>
    %cst_87 = arith.constant 0.353553385 : f32
    %292 = vector.broadcast %cst_87 : f32 to vector<8x8xf32>
    %293 = arith.mulf %291, %292 : vector<8x8xf32>
    %294 = math.exp %293 : vector<8x8xf32>
    %cst_88 = arith.constant dense<0.000000e+00> : vector<8xf32>
    %295 = vector.multi_reduction <add>, %294, %cst_88 [1] : vector<8x8xf32> to vector<8xf32>
    %296 = vector.shape_cast %295 : vector<8xf32> to vector<8x1xf32>
    %297 = tpu.reciprocal %296 {approx = true} : vector<8x1xf32> -> vector<8x1xf32>
    %298 = vector.broadcast %297 : vector<8x1xf32> to vector<8x8xf32>
    %299 = arith.mulf %294, %298 : vector<8x8xf32>
    %300 = arith.truncf %299 : vector<8x8xf32> to vector<8x8xbf16>
    %301 = arith.truncf %288 : vector<8x8xf32> to vector<8x8xbf16>
    %cst_89 = arith.constant dense<0.000000e+00> : vector<8x8xf32>
    %302 = tpu.matmul %300, %301, %cst_89 {dimension_numbers = #tpu.dot_dimension_numbers<[1], [0], [0], [1], [0, 0, 1, 1], [], []>} : vector<8x8xbf16>, vector<8x8xbf16>, vector<8x8xf32> -> vector<8x8xf32>
    %303 = tpu.concatenate %251, %268, %285, %302 in 1 : vector<8x8xf32>, vector<8x8xf32>, vector<8x8xf32>, vector<8x8xf32> -> vector<8x32xf32>
    %304 = vector.extract_strided_slice %233 {offsets = [8, 0], sizes = [8, 128], strides = [1, 1]} : vector<16x128xf32> to vector<8x128xf32>
    %305 = vector.extract_strided_slice %304 {offsets = [0, 0], sizes = [8, 8], strides = [1, 1]} : vector<8x128xf32> to vector<8x8xf32>
    %306 = vector.extract_strided_slice %304 {offsets = [0, 32], sizes = [8, 8], strides = [1, 1]} : vector<8x128xf32> to vector<8x8xf32>
    %307 = vector.extract_strided_slice %304 {offsets = [0, 64], sizes = [8, 8], strides = [1, 1]} : vector<8x128xf32> to vector<8x8xf32>
    %308 = arith.truncf %305 : vector<8x8xf32> to vector<8x8xbf16>
    %309 = arith.truncf %306 : vector<8x8xf32> to vector<8x8xbf16>
    %cst_90 = arith.constant dense<0.000000e+00> : vector<8x8xf32>
    %310 = tpu.matmul %308, %309, %cst_90 {dimension_numbers = #tpu.dot_dimension_numbers<[1], [1], [0], [0], [0, 0, 1, 0], [], []>} : vector<8x8xbf16>, vector<8x8xbf16>, vector<8x8xf32> -> vector<8x8xf32>
    %cst_91 = arith.constant 0.353553385 : f32
    %311 = vector.broadcast %cst_91 : f32 to vector<8x8xf32>
    %312 = arith.mulf %310, %311 : vector<8x8xf32>
    %313 = math.exp %312 : vector<8x8xf32>
    %cst_92 = arith.constant dense<0.000000e+00> : vector<8xf32>
    %314 = vector.multi_reduction <add>, %313, %cst_92 [1] : vector<8x8xf32> to vector<8xf32>
    %315 = vector.shape_cast %314 : vector<8xf32> to vector<8x1xf32>
    %316 = tpu.reciprocal %315 {approx = true} : vector<8x1xf32> -> vector<8x1xf32>
    %317 = vector.broadcast %316 : vector<8x1xf32> to vector<8x8xf32>
    %318 = arith.mulf %313, %317 : vector<8x8xf32>
    %319 = arith.truncf %318 : vector<8x8xf32> to vector<8x8xbf16>
    %320 = arith.truncf %307 : vector<8x8xf32> to vector<8x8xbf16>
    %cst_93 = arith.constant dense<0.000000e+00> : vector<8x8xf32>
    %321 = tpu.matmul %319, %320, %cst_93 {dimension_numbers = #tpu.dot_dimension_numbers<[1], [0], [0], [1], [0, 0, 1, 1], [], []>} : vector<8x8xbf16>, vector<8x8xbf16>, vector<8x8xf32> -> vector<8x8xf32>
    %322 = vector.extract_strided_slice %304 {offsets = [0, 8], sizes = [8, 8], strides = [1, 1]} : vector<8x128xf32> to vector<8x8xf32>
    %323 = vector.extract_strided_slice %304 {offsets = [0, 40], sizes = [8, 8], strides = [1, 1]} : vector<8x128xf32> to vector<8x8xf32>
    %324 = vector.extract_strided_slice %304 {offsets = [0, 72], sizes = [8, 8], strides = [1, 1]} : vector<8x128xf32> to vector<8x8xf32>
    %325 = arith.truncf %322 : vector<8x8xf32> to vector<8x8xbf16>
    %326 = arith.truncf %323 : vector<8x8xf32> to vector<8x8xbf16>
    %cst_94 = arith.constant dense<0.000000e+00> : vector<8x8xf32>
    %327 = tpu.matmul %325, %326, %cst_94 {dimension_numbers = #tpu.dot_dimension_numbers<[1], [1], [0], [0], [0, 0, 1, 0], [], []>} : vector<8x8xbf16>, vector<8x8xbf16>, vector<8x8xf32> -> vector<8x8xf32>
    %cst_95 = arith.constant 0.353553385 : f32
    %328 = vector.broadcast %cst_95 : f32 to vector<8x8xf32>
    %329 = arith.mulf %327, %328 : vector<8x8xf32>
    %330 = math.exp %329 : vector<8x8xf32>
    %cst_96 = arith.constant dense<0.000000e+00> : vector<8xf32>
    %331 = vector.multi_reduction <add>, %330, %cst_96 [1] : vector<8x8xf32> to vector<8xf32>
    %332 = vector.shape_cast %331 : vector<8xf32> to vector<8x1xf32>
    %333 = tpu.reciprocal %332 {approx = true} : vector<8x1xf32> -> vector<8x1xf32>
    %334 = vector.broadcast %333 : vector<8x1xf32> to vector<8x8xf32>
    %335 = arith.mulf %330, %334 : vector<8x8xf32>
    %336 = arith.truncf %335 : vector<8x8xf32> to vector<8x8xbf16>
    %337 = arith.truncf %324 : vector<8x8xf32> to vector<8x8xbf16>
    %cst_97 = arith.constant dense<0.000000e+00> : vector<8x8xf32>
    %338 = tpu.matmul %336, %337, %cst_97 {dimension_numbers = #tpu.dot_dimension_numbers<[1], [0], [0], [1], [0, 0, 1, 1], [], []>} : vector<8x8xbf16>, vector<8x8xbf16>, vector<8x8xf32> -> vector<8x8xf32>
    %339 = vector.extract_strided_slice %304 {offsets = [0, 16], sizes = [8, 8], strides = [1, 1]} : vector<8x128xf32> to vector<8x8xf32>
    %340 = vector.extract_strided_slice %304 {offsets = [0, 48], sizes = [8, 8], strides = [1, 1]} : vector<8x128xf32> to vector<8x8xf32>
    %341 = vector.extract_strided_slice %304 {offsets = [0, 80], sizes = [8, 8], strides = [1, 1]} : vector<8x128xf32> to vector<8x8xf32>
    %342 = arith.truncf %339 : vector<8x8xf32> to vector<8x8xbf16>
    %343 = arith.truncf %340 : vector<8x8xf32> to vector<8x8xbf16>
    %cst_98 = arith.constant dense<0.000000e+00> : vector<8x8xf32>
    %344 = tpu.matmul %342, %343, %cst_98 {dimension_numbers = #tpu.dot_dimension_numbers<[1], [1], [0], [0], [0, 0, 1, 0], [], []>} : vector<8x8xbf16>, vector<8x8xbf16>, vector<8x8xf32> -> vector<8x8xf32>
    %cst_99 = arith.constant 0.353553385 : f32
    %345 = vector.broadcast %cst_99 : f32 to vector<8x8xf32>
    %346 = arith.mulf %344, %345 : vector<8x8xf32>
    %347 = math.exp %346 : vector<8x8xf32>
    %cst_100 = arith.constant dense<0.000000e+00> : vector<8xf32>
    %348 = vector.multi_reduction <add>, %347, %cst_100 [1] : vector<8x8xf32> to vector<8xf32>
    %349 = vector.shape_cast %348 : vector<8xf32> to vector<8x1xf32>
    %350 = tpu.reciprocal %349 {approx = true} : vector<8x1xf32> -> vector<8x1xf32>
    %351 = vector.broadcast %350 : vector<8x1xf32> to vector<8x8xf32>
    %352 = arith.mulf %347, %351 : vector<8x8xf32>
    %353 = arith.truncf %352 : vector<8x8xf32> to vector<8x8xbf16>
    %354 = arith.truncf %341 : vector<8x8xf32> to vector<8x8xbf16>
    %cst_101 = arith.constant dense<0.000000e+00> : vector<8x8xf32>
    %355 = tpu.matmul %353, %354, %cst_101 {dimension_numbers = #tpu.dot_dimension_numbers<[1], [0], [0], [1], [0, 0, 1, 1], [], []>} : vector<8x8xbf16>, vector<8x8xbf16>, vector<8x8xf32> -> vector<8x8xf32>
    %356 = vector.extract_strided_slice %304 {offsets = [0, 24], sizes = [8, 8], strides = [1, 1]} : vector<8x128xf32> to vector<8x8xf32>
    %357 = vector.extract_strided_slice %304 {offsets = [0, 56], sizes = [8, 8], strides = [1, 1]} : vector<8x128xf32> to vector<8x8xf32>
    %358 = vector.extract_strided_slice %304 {offsets = [0, 88], sizes = [8, 8], strides = [1, 1]} : vector<8x128xf32> to vector<8x8xf32>
    %359 = arith.truncf %356 : vector<8x8xf32> to vector<8x8xbf16>
    %360 = arith.truncf %357 : vector<8x8xf32> to vector<8x8xbf16>
    %cst_102 = arith.constant dense<0.000000e+00> : vector<8x8xf32>
    %361 = tpu.matmul %359, %360, %cst_102 {dimension_numbers = #tpu.dot_dimension_numbers<[1], [1], [0], [0], [0, 0, 1, 0], [], []>} : vector<8x8xbf16>, vector<8x8xbf16>, vector<8x8xf32> -> vector<8x8xf32>
    %cst_103 = arith.constant 0.353553385 : f32
    %362 = vector.broadcast %cst_103 : f32 to vector<8x8xf32>
    %363 = arith.mulf %361, %362 : vector<8x8xf32>
    %364 = math.exp %363 : vector<8x8xf32>
    %cst_104 = arith.constant dense<0.000000e+00> : vector<8xf32>
    %365 = vector.multi_reduction <add>, %364, %cst_104 [1] : vector<8x8xf32> to vector<8xf32>
    %366 = vector.shape_cast %365 : vector<8xf32> to vector<8x1xf32>
    %367 = tpu.reciprocal %366 {approx = true} : vector<8x1xf32> -> vector<8x1xf32>
    %368 = vector.broadcast %367 : vector<8x1xf32> to vector<8x8xf32>
    %369 = arith.mulf %364, %368 : vector<8x8xf32>
    %370 = arith.truncf %369 : vector<8x8xf32> to vector<8x8xbf16>
    %371 = arith.truncf %358 : vector<8x8xf32> to vector<8x8xbf16>
    %cst_105 = arith.constant dense<0.000000e+00> : vector<8x8xf32>
    %372 = tpu.matmul %370, %371, %cst_105 {dimension_numbers = #tpu.dot_dimension_numbers<[1], [0], [0], [1], [0, 0, 1, 1], [], []>} : vector<8x8xbf16>, vector<8x8xbf16>, vector<8x8xf32> -> vector<8x8xf32>
    %373 = tpu.concatenate %321, %338, %355, %372 in 1 : vector<8x8xf32>, vector<8x8xf32>, vector<8x8xf32>, vector<8x8xf32> -> vector<8x32xf32>
    %374 = tpu.concatenate %303, %373 in 0 : vector<8x32xf32>, vector<8x32xf32> -> vector<16x32xf32>
    %375 = arith.truncf %374 : vector<16x32xf32> to vector<16x32xbf16>
    %cst_106 = arith.constant dense<0.000000e+00> : vector<16x32xf32>
    %376 = tpu.matmul %375, %219, %cst_106 {dimension_numbers = #tpu.dot_dimension_numbers<[1], [0], [0], [1], [0, 0, 1, 1], [], []>} : vector<16x32xbf16>, vector<32x32xbf16>, vector<16x32xf32> -> vector<16x32xf32>
    %377 = vector.broadcast %223 : vector<1x32xf32> to vector<16x32xf32>
    %378 = arith.addf %376, %377 : vector<16x32xf32>
    %379 = arith.addf %217, %378 : vector<16x32xf32>
    %cst_107 = arith.constant dense<0.000000e+00> : vector<16xf32>
    %380 = vector.multi_reduction <add>, %379, %cst_107 [1] : vector<16x32xf32> to vector<16xf32>
    %381 = vector.shape_cast %380 : vector<16xf32> to vector<16x1xf32>
    %cst_108 = arith.constant 3.200000e+01 : f32
    %382 = vector.broadcast %cst_108 : f32 to vector<16x1xf32>
    %383 = arith.divf %381, %382 : vector<16x1xf32>
    %384 = vector.broadcast %383 : vector<16x1xf32> to vector<16x32xf32>
    %385 = arith.subf %379, %384 : vector<16x32xf32>
    %386 = arith.mulf %385, %385 : vector<16x32xf32>
    %cst_109 = arith.constant dense<0.000000e+00> : vector<16xf32>
    %387 = vector.multi_reduction <add>, %386, %cst_109 [1] : vector<16x32xf32> to vector<16xf32>
    %388 = vector.shape_cast %387 : vector<16xf32> to vector<16x1xf32>
    %cst_110 = arith.constant 3.200000e+01 : f32
    %389 = vector.broadcast %cst_110 : f32 to vector<16x1xf32>
    %390 = arith.divf %388, %389 : vector<16x1xf32>
    %391 = vector.broadcast %383 : vector<16x1xf32> to vector<16x32xf32>
    %392 = arith.subf %379, %391 : vector<16x32xf32>
    %cst_111 = arith.constant 9.99999974E-6 : f32
    %393 = vector.broadcast %cst_111 : f32 to vector<16x1xf32>
    %394 = arith.addf %390, %393 : vector<16x1xf32>
    %395 = math.rsqrt %394 : vector<16x1xf32>
    %396 = vector.broadcast %395 : vector<16x1xf32> to vector<16x32xf32>
    %397 = arith.mulf %392, %396 : vector<16x32xf32>
    %398 = vector.broadcast %226 : vector<1x32xf32> to vector<16x32xf32>
    %399 = arith.mulf %397, %398 : vector<16x32xf32>
    %400 = vector.broadcast %227 : vector<1x32xf32> to vector<16x32xf32>
    %401 = arith.addf %399, %400 : vector<16x32xf32>
    %402 = arith.truncf %401 : vector<16x32xf32> to vector<16x32xbf16>
    %cst_112 = arith.constant dense<0.000000e+00> : vector<16x128xf32>
    %403 = tpu.matmul %402, %220, %cst_112 {dimension_numbers = #tpu.dot_dimension_numbers<[1], [0], [0], [1], [0, 0, 1, 1], [], []>} : vector<16x32xbf16>, vector<32x128xbf16>, vector<16x128xf32> -> vector<16x128xf32>
    %404 = vector.broadcast %224 : vector<1x128xf32> to vector<16x128xf32>
    %405 = arith.addf %403, %404 : vector<16x128xf32>
    %cst_113 = arith.constant 0.000000e+00 : f32
    %406 = vector.broadcast %cst_113 : f32 to vector<16x128xf32>
    %407 = arith.maximumf %405, %406 : vector<16x128xf32>
    %408 = arith.truncf %407 : vector<16x128xf32> to vector<16x128xbf16>
    %cst_114 = arith.constant dense<0.000000e+00> : vector<16x32xf32>
    %409 = tpu.matmul %408, %221, %cst_114 {dimension_numbers = #tpu.dot_dimension_numbers<[1], [0], [0], [1], [0, 0, 1, 1], [], []>} : vector<16x128xbf16>, vector<128x32xbf16>, vector<16x32xf32> -> vector<16x32xf32>
    %410 = vector.broadcast %225 : vector<1x32xf32> to vector<16x32xf32>
    %411 = arith.addf %409, %410 : vector<16x32xf32>
    %412 = arith.addf %401, %411 : vector<16x32xf32>
    %cst_115 = arith.constant dense<0.000000e+00> : vector<16xf32>
    %413 = vector.multi_reduction <add>, %412, %cst_115 [1] : vector<16x32xf32> to vector<16xf32>
    %414 = vector.shape_cast %413 : vector<16xf32> to vector<16x1xf32>
    %cst_116 = arith.constant 3.200000e+01 : f32
    %415 = vector.broadcast %cst_116 : f32 to vector<16x1xf32>
    %416 = arith.divf %414, %415 : vector<16x1xf32>
    %417 = vector.broadcast %416 : vector<16x1xf32> to vector<16x32xf32>
    %418 = arith.subf %412, %417 : vector<16x32xf32>
    %419 = arith.mulf %418, %418 : vector<16x32xf32>
    %cst_117 = arith.constant dense<0.000000e+00> : vector<16xf32>
    %420 = vector.multi_reduction <add>, %419, %cst_117 [1] : vector<16x32xf32> to vector<16xf32>
    %421 = vector.shape_cast %420 : vector<16xf32> to vector<16x1xf32>
    %cst_118 = arith.constant 3.200000e+01 : f32
    %422 = vector.broadcast %cst_118 : f32 to vector<16x1xf32>
    %423 = arith.divf %421, %422 : vector<16x1xf32>
    %424 = vector.broadcast %416 : vector<16x1xf32> to vector<16x32xf32>
    %425 = arith.subf %412, %424 : vector<16x32xf32>
    %cst_119 = arith.constant 9.99999974E-6 : f32
    %426 = vector.broadcast %cst_119 : f32 to vector<16x1xf32>
    %427 = arith.addf %423, %426 : vector<16x1xf32>
    %428 = math.rsqrt %427 : vector<16x1xf32>
    %429 = vector.broadcast %428 : vector<16x1xf32> to vector<16x32xf32>
    %430 = arith.mulf %425, %429 : vector<16x32xf32>
    %431 = vector.broadcast %228 : vector<1x32xf32> to vector<16x32xf32>
    %432 = arith.mulf %430, %431 : vector<16x32xf32>
    %433 = vector.broadcast %229 : vector<1x32xf32> to vector<16x32xf32>
    %434 = arith.addf %432, %433 : vector<16x32xf32>
    %c448 = arith.constant 448 : index
    %c0_120 = arith.constant 0 : index
    %435 = vector.load %arg1[%c448, %c0_120] : memref<480x128xbf16, #tpu.memory_space<vmem>>, vector<32x128xbf16>
    %c16 = arith.constant 16 : index
    %c0_121 = arith.constant 0 : index
    %436 = vector.load %arg2[%c16, %c0_121] : memref<24x128xf32, #tpu.memory_space<vmem>>, vector<1x128xf32>
    %437 = arith.truncf %434 : vector<16x32xf32> to vector<16x32xbf16>
    %cst_122 = arith.constant dense<0.000000e+00> : vector<16x128xf32>
    %438 = tpu.matmul %437, %435, %cst_122 {dimension_numbers = #tpu.dot_dimension_numbers<[1], [0], [0], [1], [0, 0, 1, 1], [], []>} : vector<16x32xbf16>, vector<32x128xbf16>, vector<16x128xf32> -> vector<16x128xf32>
    %439 = vector.broadcast %436 : vector<1x128xf32> to vector<16x128xf32>
    %440 = arith.addf %438, %439 : vector<16x128xf32>
    %441 = vector.extract_strided_slice %440 {offsets = [0, 0], sizes = [8, 128], strides = [1, 1]} : vector<16x128xf32> to vector<8x128xf32>
    %cst_123 = arith.constant dense<0xFF800000> : vector<128xf32>
    %442 = vector.multi_reduction <maximumf>, %441, %cst_123 [0] : vector<8x128xf32> to vector<128xf32>
    %443 = vector.shape_cast %442 : vector<128xf32> to vector<1x128xf32>
    %444 = vector.broadcast %443 : vector<1x128xf32> to vector<8x128xf32>
    %445 = arith.subf %441, %444 : vector<8x128xf32>
    %446 = math.exp %445 : vector<8x128xf32>
    %cst_124 = arith.constant dense<0.000000e+00> : vector<128xf32>
    %447 = vector.multi_reduction <add>, %446, %cst_124 [0] : vector<8x128xf32> to vector<128xf32>
    %448 = vector.shape_cast %447 : vector<128xf32> to vector<1x128xf32>
    %449 = math.log %448 : vector<1x128xf32>
    %450 = arith.addf %443, %449 : vector<1x128xf32>
    %451 = vector.broadcast %450 : vector<1x128xf32> to vector<8x128xf32>
    %452 = arith.subf %441, %451 : vector<8x128xf32>
    %453 = vector.extract_strided_slice %440 {offsets = [8, 0], sizes = [8, 128], strides = [1, 1]} : vector<16x128xf32> to vector<8x128xf32>
    %cst_125 = arith.constant dense<0xFF800000> : vector<128xf32>
    %454 = vector.multi_reduction <maximumf>, %453, %cst_125 [0] : vector<8x128xf32> to vector<128xf32>
    %455 = vector.shape_cast %454 : vector<128xf32> to vector<1x128xf32>
    %456 = vector.broadcast %455 : vector<1x128xf32> to vector<8x128xf32>
    %457 = arith.subf %453, %456 : vector<8x128xf32>
    %458 = math.exp %457 : vector<8x128xf32>
    %cst_126 = arith.constant dense<0.000000e+00> : vector<128xf32>
    %459 = vector.multi_reduction <add>, %458, %cst_126 [0] : vector<8x128xf32> to vector<128xf32>
    %460 = vector.shape_cast %459 : vector<128xf32> to vector<1x128xf32>
    %461 = math.log %460 : vector<1x128xf32>
    %462 = arith.addf %455, %461 : vector<1x128xf32>
    %463 = vector.broadcast %462 : vector<1x128xf32> to vector<8x128xf32>
    %464 = arith.subf %453, %463 : vector<8x128xf32>
    %465 = tpu.concatenate %452, %464 in 0 : vector<8x128xf32>, vector<8x128xf32> -> vector<16x128xf32>
    %c0_127 = arith.constant 0 : index
    %c0_128 = arith.constant 0 : index
    %466 = vector.load %arg3[%c0_127, %c0_128] : memref<16x128xf32, #tpu.memory_space<vmem>>, vector<16x128xf32>
    tpu.vector_store %arg3[%c0_127, %c0_128], %465 {strides = array<i32>} : memref<16x128xf32, #tpu.memory_space<vmem>>, vector<16x128xf32>,
    return
  }
}

</mosaic_0001>

<bundles_post_ra>
// kernel: tpu_custom_call.1
= control target key start
LH: loop header
LB: loop body
LE: loop exit
PB: predicated region body
PF: predicated region fallthrough
CT: control target
= control target key end

     0   :  { %8 = vsyncpa [#allocation3], 0  ;;  %s3990_s0 = inlined_call_operand.hbm [shape: f32[16,32], index: 0, kind: input, shape index: {}]   ;;  %s3991_s1 = inlined_call_operand.hbm [shape: bf16[480,128], index: 1, kind: input, shape index: {}]   ;;  %s3992_s2 = inlined_call_operand.hbm [shape: f32[24,128], index: 2, kind: input, shape index: {}]   ;;  %s3993_s3 = inlined_call_operand.hbm [shape: f32[16,128], index: 3, kind: output, shape index: {}]  }
   0x1   :  { %9 = vsyncpa [#allocation6], 0 }
   0x2   :  { %10 = vsyncpa [#allocation4], 0  ;;  %s3484_s12 = smov [#allocation5]  }
   0x3   :  { %s28_s13 = sshll.u32 %s3484_s12, 4  ;;  %s29_s13 = int_to_ptr.vmem [resolvable:$true] %s28_s13 }
   0x4   :  { %s3406_s14 = scalar_lea.vmem %s29_s13, 3840  ;;  %p3411_p1 = scmp.lt.s32.totalorder %s29_s13, %s29_s13 }
   0x5   :  { %p3407_p0 = scmp.ne.s32.totalorder %s29_s13, %s3406_s14  ;;  %p3412_p2 = scmp.lt.s32.totalorder %s3406_s14, %s3406_s14 }
   0x7   :  { %p3413_p3 = por %p3412_p2, %p3411_p1 }
   0x9   :  { %p3414_p4 = pnand %p3413_p3, %p3407_p0 }
   0xb   :  { %3417 = shalt.err (!%p3414_p4)
}
   0xc   :  { %s3485_s15 = smov 64   ;;  %s3486_s16 = smov 4  }
   0xd   :  { %34 = dma.hbm_to_vmem [thread:$0]  %s3991_s1, 3840, %s29_s13, [#allocation6], %s3485_s15, %s3485_s15, %s3486_s16  }
   0xe   :  { %s3487_s19 = smov [#allocation2]  }
   0xf   :  { %s16_s20 = sshll.u32 %s3487_s19, 4  ;;  %s17_s20 = int_to_ptr.vmem [resolvable:$true] %s16_s20 }
  0x10   :  { %s3426_s21 = scalar_lea.vmem %s17_s20, 256  ;;  %p3431_p6 = scmp.lt.s32.totalorder %s17_s20, %s17_s20 }
  0x11   :  { %p3427_p5 = scmp.ne.s32.totalorder %s17_s20, %s3426_s21  ;;  %p3432_p7 = scmp.lt.s32.totalorder %s3426_s21, %s3426_s21 }
  0x13   :  { %p3433_p8 = por %p3432_p7, %p3431_p6 }
  0x15   :  { %p3434_p9 = pnand %p3433_p8, %p3427_p5 }
  0x17   :  { %3437 = shalt.err (!%p3434_p9)
}
  0x18   :  { %s3488_s22 = smov 128   ;;  %s3489_s23 = smov 8  }
  0x19   :  { %22 = dma.hbm_to_vmem [thread:$0]  %s3990_s0, 256, %s17_s20, [#allocation3], %s3488_s22, %s3488_s22, %s3489_s23  }
  0x1a   :  { %s3490_s1 = smov [#allocation7]  }
  0x1b   :  { %s40_s26 = sshll.u32 %s3490_s1, 4  ;;  %s41_s26 = int_to_ptr.vmem [resolvable:$true] %s40_s26 }
  0x1c   :  { %s3446_s27 = scalar_lea.vmem %s41_s26, 384  ;;  %p3451_p11 = scmp.lt.s32.totalorder %s41_s26, %s41_s26 }
  0x1d   :  { %p3447_p10 = scmp.ne.s32.totalorder %s41_s26, %s3446_s27  ;;  %p3452_p12 = scmp.lt.s32.totalorder %s3446_s27, %s3446_s27 }
  0x1f   :  { %p3453_p13 = por %p3452_p12, %p3451_p11 }
  0x21   :  { %p3454_p0 = pnand %p3453_p13, %p3447_p10 }
  0x23   :  { %3457 = shalt.err (!%p3454_p0)
}
  0x24   :  { %46 = dma.hbm_to_vmem [thread:$0]  %s3992_s2, 384, %s41_s26, [#allocation6], %s3488_s22, %s3488_s22, %s3489_s23  }
  0x25   :  { %3478 = dma.done.wait [#allocation3], 256  }
  0x26   :  { %3479 = vsyncadd [#allocation3], 4294967040 }
  0x27   :  { %3480 = dma.done.wait [#allocation6], 4224  }
  0x28   :  { %3481 = vsyncadd [#allocation6], 4294963072  ;;  %v3491_v0 = vmov 0.0   ;;  %vm3492_vm0 = vmmov 0   ;;  %v3280_v1 = vld [vmem:[#allocation5 + $0x8] sm:$0xff]   ;;  %v3281_v2 = vld [vmem:[#allocation5] sm:$0xff]  }
  0x29   :  { %2940 = vmatprep.subr.bf16.mxu1 %v3491_v0  ;;  %2944 = vmatprep.mubr.msk.bf16.mxu1 %vm3492_vm0, %v3491_v0  ;;  %v3549_v3 = vld [vmem:[#allocation2] sm:$0xff]  ;;  %v3551_v4 = vld [vmem:[#allocation2 + $0x8] sm:$0xff]  ;;  %vm112_vm1 = vcmask 261120   ;;  %s3493_s0 = smov 120   ;;  %s3494_s2 = smov 96   ;;  %vm161_vm2 = vcmask 64512  }
  0x2a   :  { %2954 = vmatprep.subr.bf16.mxu0 %v3491_v0  ;;  %2956 = vmatprep.mubr.msk.bf16.mxu0 %vm3492_vm0, %v3491_v0  ;;  %v95_v5 = vpack.c.bf16 %v3551_v4, %v3549_v3  ;;  %v2751_v6 = vld [vmem:[#allocation7] ss:$0 sm:$0xff]  ;;  %s3495_s30 = smov 80   ;;  %s3496_s4 = smov 88   ;;  %vm222_vm3 = vcmask 1043456   ;;  %vm600_vm4 = vcmask 130048  }
  0x2b   :  { %2941 = vmatpush3.bf16.msra.mxu1 %v3280_v1  ;;  %s3497_s5 = smov 72   ;;  %s3498_s6 = smov 112   ;;  %vm602_vm5 = vcmask 195584  }
  0x2c   :  { %2942 = vmatprep.subr.bf16.mxu1 %v3491_v0  ;;  %s3499_s7 = smov 104   ;;  %s3500_s8 = smov 56  }
  0x2d   :  { %s3501_s9 = smov 48   ;;  %s3502_s10 = smov 40  }
  0x2e   :  { %s3503_s11 = smov 16   ;;  %s3504_s12 = smov 24  }
  0x2f   :  { %2943 = vmatpush3.bf16.msra.mxu1 %v3281_v2  ;;  %s3505_s13 = smov [#allocation8]  }
  0x30   :  { %2948 = vmatprep.subr.bf16.mxu1 %v3491_v0  ;;  %s2738_s14 = sshll.u32 %s3505_s13, 4  ;;  %s2739_s14 = int_to_ptr.vmem [resolvable:$true] %s2738_s14 }
  0x31   :  { %p3463_p2 = scmp.lt.s32.totalorder %s2739_s14, %s2739_s14 }
  0x32   :  { %2945 = vmatmul.mubr.msk.bf16.vlgmr.msra.gmra.mxu1 %vm112_vm1, %v95_v5 }
  0x33   :  { %2950 = vmatprep.mubr.msk.bf16.mxu1 %vm3492_vm0, %v3491_v0 }
  0xf2   :  { %v150_v7 = vpop.f32.mrf.mxu1 }
  0xf3   :  { %v151_v8 = vadd.f32 %v2751_v6, %v150_v7 }
  0xf4   :  { %v2946_v9 = vpop.f32.mrf.mxu1 }
  0xf5   :  { %v3560_v10 = vpack.c.bf16 %v151_v8, %v151_v8 }
  0xf6   :  { %v153_v11 = vpop.f32.mrf.mxu1 }
  0xf7   :  { %266 = vrot.lane.b32.xlu1 %v3560_v10, %s3493_s0  ;;  %159 = vrot.lane.b32.xlu0 %v3560_v10, %s3494_s2  ;;  %v154_v13 = vadd.f32 %v2751_v6, %v153_v11 }
  0xf8   :  { %v2947_v12 = vpop.f32.mrf.mxu1 }
  0xf9   :  { %v3574_v14 = vpack.c.bf16 %v154_v13, %v154_v13 }
  0xfb   :  { %375 = vrot.lane.b32.xlu1 %v3560_v10, %s3495_s30  ;;  %268 = vrot.lane.b32.xlu0 %v3560_v10, %s3496_s4 }
  0xff   :  { %482 = vrot.lane.b32.xlu1 %v3560_v10, %s3497_s5  ;;  %373 = vrot.lane.b32.xlu0 %v3560_v10, %s3498_s6 }
 0x103   :  { %480 = vrot.lane.b32.xlu0 %v3560_v10, %s3499_s7  ;;  %606 = vrot.lane.b32.xlu1 %v3574_v14, %s3494_s2 }
 0x107   :  { %713 = vrot.lane.b32.xlu0 %v3574_v14, %s3496_s4  ;;  %711 = vrot.lane.b32.xlu1 %v3574_v14, %s3493_s0 }
 0x10b   :  { %820 = vrot.lane.b32.xlu0 %v3574_v14, %s3495_s30  ;;  %818 = vrot.lane.b32.xlu1 %v3574_v14, %s3498_s6 }
 0x10f   :  { %927 = vrot.lane.b32.xlu0 %v3574_v14, %s3497_s5  ;;  %925 = vrot.lane.b32.xlu1 %v3574_v14, %s3499_s7 }
 0x113   :  { %325 = vrot.lane.b32.xlu0 %v3560_v10, %s3500_s8  ;;  %217 = vrot.lane.b32.xlu1 %v3560_v10, %s3485_s15 }
 0x169   :  { %v267_v15 = vpop.permute.xlu1 %266  ;;  %v160_v16 = vpop.permute.xlu0 %159 }
 0x16a   :  { %v166_v17 = vsel %vm161_vm2, %v160_v16, 0 }
 0x16b   :  { %2949 = vmatpush3.bf16.xpose.msra.mxu1 %v166_v17 }
 0x16c   :  { %2960 = vmatprep.subr.bf16.mxu1 %v3491_v0 }
 0x16d   :  { %v376_v18 = vpop.permute.xlu1 %375  ;;  %v269_v19 = vpop.permute.xlu0 %268 }
 0x16e   :  { %v274_v21 = vsel %vm161_vm2, %v269_v19, 0  ;;  %v381_v24 = vsel %vm161_vm2, %v376_v18, 0 }
 0x171   :  { %v483_v20 = vpop.permute.xlu1 %482  ;;  %v374_v26 = vpop.permute.xlu0 %373 }
 0x172   :  { %2951 = vmatmul.mubr.msk.bf16.vlgmr.msra.gmra.mxu1 %vm161_vm2, %v3560_v10  ;;  %v488_v28 = vsel %vm161_vm2, %v483_v20, 0 }
 0x173   :  { %2961 = vmatpush3.bf16.xpose.msra.mxu1 %v274_v21  ;;  %2962 = vmatprep.mubr.msk.bf16.mxu1 %vm3492_vm0, %v3491_v0 }
 0x174   :  { %2972 = vmatprep.subr.bf16.mxu1 %v3491_v0 }
 0x175   :  { %v607_v22 = vpop.permute.xlu1 %606  ;;  %v481_v31 = vpop.permute.xlu0 %480 }
 0x176   :  { %v612_v32 = vsel %vm161_vm2, %v607_v22, 0 }
 0x179   :  { %v712_v23 = vpop.permute.xlu1 %711  ;;  %v714_v33 = vpop.permute.xlu0 %713 }
 0x17a   :  { %2963 = vmatmul.mubr.msk.bf16.vlgmr.msra.gmra.mxu1 %vm161_vm2, %v267_v15  ;;  %v719_v34 = vsel %vm161_vm2, %v714_v33, 0 }
 0x17b   :  { %2973 = vmatpush3.bf16.xpose.msra.mxu1 %v381_v24  ;;  %2974 = vmatprep.mubr.msk.bf16.mxu1 %vm3492_vm0, %v3491_v0 }
 0x17c   :  { %2984 = vmatprep.subr.bf16.mxu1 %v3491_v0 }
 0x17d   :  { %v819_v25 = vpop.permute.xlu1 %818  ;;  %v821_v35 = vpop.permute.xlu0 %820 }
 0x17e   :  { %v826_v36 = vsel %vm161_vm2, %v821_v35, 0 }
 0x181   :  { %v926_v27 = vpop.permute.xlu1 %925  ;;  %v928_v37 = vpop.permute.xlu0 %927 }
 0x182   :  { %2975 = vmatmul.mubr.msk.bf16.vlgmr.msra.gmra.mxu1 %vm161_vm2, %v374_v26  ;;  %v933_v38 = vsel %vm161_vm2, %v928_v37, 0 }
 0x183   :  { %2985 = vmatpush3.bf16.xpose.msra.mxu1 %v488_v28  ;;  %2986 = vmatprep.mubr.msk.bf16.mxu1 %vm3492_vm0, %v3491_v0 }
 0x184   :  { %2996 = vmatprep.subr.bf16.mxu1 %v3491_v0 }
 0x185   :  { %v218_v29 = vpop.permute.xlu1 %217 }
 0x186   :  { %v224_v30 = vsel %vm222_vm3, %v218_v29, 0 }
 0x187   :  { %2955 = vmatpush3.bf16.msra.mxu0 %v224_v30 }
 0x188   :  { %2966 = vmatprep.subr.bf16.mxu0 %v3491_v0 }
 0x18a   :  { %2987 = vmatmul.mubr.msk.bf16.vlgmr.msra.gmra.mxu1 %vm161_vm2, %v481_v31 }
 0x18b   :  { %2997 = vmatpush3.bf16.xpose.msra.mxu1 %v612_v32  ;;  %2998 = vmatprep.mubr.msk.bf16.mxu1 %vm3492_vm0, %v3491_v0 }
 0x18c   :  { %3008 = vmatprep.subr.bf16.mxu1 %v3491_v0 }
 0x192   :  { %2999 = vmatmul.mubr.msk.bf16.vlgmr.msra.gmra.mxu1 %vm161_vm2, %v3574_v14 }
 0x193   :  { %3009 = vmatpush3.bf16.xpose.msra.mxu1 %v719_v34  ;;  %3010 = vmatprep.mubr.msk.bf16.mxu1 %vm3492_vm0, %v3491_v0 }
 0x194   :  { %3020 = vmatprep.subr.bf16.mxu1 %v3491_v0 }
 0x19a   :  { %3011 = vmatmul.mubr.msk.bf16.vlgmr.msra.gmra.mxu1 %vm161_vm2, %v712_v23 }
 0x19b   :  { %3021 = vmatpush3.bf16.xpose.msra.mxu1 %v826_v36  ;;  %3022 = vmatprep.mubr.msk.bf16.mxu1 %vm3492_vm0, %v3491_v0 }
 0x19c   :  { %3032 = vmatprep.subr.bf16.mxu1 %v3491_v0 }
 0x1a2   :  { %3023 = vmatmul.mubr.msk.bf16.vlgmr.msra.gmra.mxu1 %vm161_vm2, %v819_v25 }
 0x1a3   :  { %3033 = vmatpush3.bf16.xpose.msra.mxu1 %v933_v38  ;;  %3034 = vmatprep.mubr.msk.bf16.mxu1 %vm3492_vm0, %v3491_v0 }
 0x1a4   :  { %3044 = vmatprep.subr.bf16.mxu1 %v3491_v0 }
 0x1aa   :  { %3035 = vmatmul.mubr.msk.bf16.vlgmr.msra.gmra.mxu1 %vm161_vm2, %v926_v27 }
 0x1ab   :  { %3048 = vmatprep.mubr.msk.bf16.mxu1 %vm3492_vm0, %v3491_v0 }
 0x232   :  { %v202_v39 = vpop.f32.mrf.mxu1 }
 0x233   :  { %v208_v40 = vmul.f32 0.35355338, %v202_v39 }
 0x234   :  { %v2952_v41 = vpop.f32.mrf.mxu1 }
 0x235   :  { %v209_v42 = vmul.f32 1.442695, %v208_v40 }
 0x236   :  { %v205_v43 = vpop.f32.mrf.mxu1 }
 0x237   :  { %3310 = vpow2.f32 %v209_v42  ;;  %v326_v43 = vpop.permute.xlu0 %325 }
 0x238   :  { %v2953_v44 = vpop.f32.mrf.mxu1 }
 0x23a   :  { %v310_v45 = vpop.f32.mrf.mxu1 }
 0x23b   :  { %v316_v46 = vmul.f32 0.35355338, %v310_v45 }
 0x23c   :  { %v2964_v47 = vpop.f32.mrf.mxu1 }
 0x23d   :  { %v317_v48 = vmul.f32 1.442695, %v316_v46 }
 0x23e   :  { %v313_v49 = vpop.f32.mrf.mxu1 }
 0x23f   :  { %3312 = vpow2.f32 %v317_v48  ;;  %v331_v49 = vsel %vm222_vm3, %v326_v43, 0 }
 0x240   :  { %v2965_v50 = vpop.f32.mrf.mxu1 }
 0x242   :  { %v417_v51 = vpop.f32.mrf.mxu1 }
 0x243   :  { %v423_v11 = vmul.f32 0.35355338, %v417_v51 }
 0x244   :  { %v3640_v52 = vpop.eup %3310  ;;  %v2976_v53 = vpop.f32.mrf.mxu1 }
 0x245   :  { %v211_v54 = vsel %vm161_vm2, %v3640_v52, 0.0  ;;  %v424_v15 = vmul.f32 1.442695, %v423_v11 }
 0x246   :  { %212 = vadd.xlane.f32.xlu0 %v211_v54  ;;  %v420_v55 = vpop.f32.mrf.mxu1 }
 0x247   :  { %3314 = vpow2.f32 %v424_v15 }
 0x248   :  { %v2977_v56 = vpop.f32.mrf.mxu1 }
 0x24a   :  { %v524_v57 = vpop.f32.mrf.mxu1 }
 0x24b   :  { %v530_v16 = vmul.f32 0.35355338, %v524_v57 }
 0x24c   :  { %v3644_v58 = vpop.eup %3312  ;;  %v2988_v59 = vpop.f32.mrf.mxu1 }
 0x24d   :  { %v319_v60 = vsel %vm161_vm2, %v3644_v58, 0.0  ;;  %v531_v20 = vmul.f32 1.442695, %v530_v16 }
 0x24e   :  { %320 = vadd.xlane.f32.xlu1 %v319_v60  ;;  %v527_v61 = vpop.f32.mrf.mxu1 }
 0x24f   :  { %3316 = vpow2.f32 %v531_v20 }
 0x250   :  { %v2989_v62 = vpop.f32.mrf.mxu1 }
 0x252   :  { %v648_v63 = vpop.f32.mrf.mxu1 }
 0x253   :  { %v654_v19 = vmul.f32 0.35355338, %v648_v63 }
 0x254   :  { %v3000_v1 = vpop.f32.mrf.mxu1  ;;  %v3315_v31 = vpop.eup %3314 }
 0x255   :  { %v655_v24 = vmul.f32 1.442695, %v654_v19  ;;  %v426_v32 = vsel %vm161_vm2, %v3315_v31, 0.0 }
 0x256   :  { %v651_v2 = vpop.f32.mrf.mxu1 }
 0x257   :  { %3318 = vpow2.f32 %v655_v24 }
 0x258   :  { %v3001_v5 = vpop.f32.mrf.mxu1 }
 0x25a   :  { %v755_v6 = vpop.f32.mrf.mxu1 }
 0x25b   :  { %v761_v21 = vmul.f32 0.35355338, %v755_v6 }
 0x25c   :  { %432 = vrot.lane.b32.xlu0 %v3560_v10, %s3501_s9  ;;  %v3012_v7 = vpop.f32.mrf.mxu1  ;;  %v3317_v33 = vpop.eup %3316 }
 0x25d   :  { %v762_v25 = vmul.f32 1.442695, %v761_v21  ;;  %v533_v35 = vsel %vm161_vm2, %v3317_v33, 0.0 }
 0x25e   :  { %v758_v8 = vpop.f32.mrf.mxu1 }
 0x25f   :  { %539 = vrot.lane.b32.xlu1 %v3560_v10, %s3502_s10  ;;  %3320 = vpow2.f32 %v762_v25 }
 0x260   :  { %v3013_v9 = vpop.f32.mrf.mxu1 }
 0x262   :  { %v862_v12 = vpop.f32.mrf.mxu1 }
 0x263   :  { %v868_v26 = vmul.f32 0.35355338, %v862_v12 }
 0x264   :  { %v3024_v13 = vpop.f32.mrf.mxu1  ;;  %v3653_v34 = vpop.eup %3318 }
 0x265   :  { %v869_v28 = vmul.f32 1.442695, %v868_v26  ;;  %v657_v37 = vsel %vm161_vm2, %v3653_v34, 0.0 }
 0x266   :  { %v865_v17 = vpop.f32.mrf.mxu1 }
 0x267   :  { %3322 = vpow2.f32 %v869_v28 }
 0x268   :  { %v3025_v18 = vpop.f32.mrf.mxu1 }
 0x26a   :  { %v969_v22 = vpop.f32.mrf.mxu1 }
 0x26b   :  { %v975_v29 = vmul.f32 0.35355338, %v969_v22 }
 0x26c   :  { %v3036_v23 = vpop.f32.mrf.mxu1  ;;  %v3656_v36 = vpop.eup %3320 }
 0x26d   :  { %v976_v30 = vmul.f32 1.442695, %v975_v29  ;;  %v764_v38 = vsel %vm161_vm2, %v3656_v36, 0.0 }
 0x26e   :  { %v972_v27 = vpop.f32.mrf.mxu1 }
 0x26f   :  { %3324 = vpow2.f32 %v976_v30 }
 0x270   :  { %v3037_v10 = vpop.f32.mrf.mxu1 }
 0x274   :  { %v3662_v39 = vpop.eup %3322 }
 0x275   :  { %v871_v40 = vsel %vm161_vm2, %v3662_v39, 0.0 }
 0x27b   :  { %427 = vadd.xlane.f32.xlu0 %v426_v32 }
 0x27c   :  { %v3666_v41 = vpop.eup %3324 }
 0x27d   :  { %v978_v42 = vsel %vm161_vm2, %v3666_v41, 0.0 }
 0x27f   :  { %534 = vadd.xlane.f32.xlu0 %v533_v35 }
 0x283   :  { %658 = vadd.xlane.f32.xlu0 %v657_v37  ;;  %765 = vadd.xlane.f32.xlu1 %v764_v38 }
 0x287   :  { %872 = vadd.xlane.f32.xlu0 %v871_v40 }
 0x28b   :  { %979 = vadd.xlane.f32.xlu0 %v978_v42 }
 0x294   :  { %770 = vrot.lane.b32.xlu1 %v3574_v14, %s3500_s8 }
 0x298   :  { %877 = vrot.lane.b32.xlu1 %v3574_v14, %s3501_s9 }
 0x29c   :  { %984 = vrot.lane.b32.xlu1 %v3574_v14, %s3502_s10 }
 0x2a1   :  { %663 = vrot.lane.b32.xlu0 %v3574_v14, %s3485_s15 }
 0x2cf   :  { %v213_v44 = vpop.xlane.xlu0 %212 }
 0x2d0   :  { %3326 = vrcp.f32 %v213_v44 }
 0x2d3   :  { %v433_v51 = vpop.permute.xlu0 %432 }
 0x2d4   :  { %v438_v54 = vsel %vm222_vm3, %v433_v51, 0 }
 0x2d7   :  { %v321_v45 = vpop.xlane.xlu1 %320 }
 0x2d8   :  { %3328 = vrcp.f32 %v321_v45 }
 0x2db   :  { %v540_v59 = vpop.permute.xlu1 %539 }
 0x2dc   :  { %v545_v2 = vsel %vm222_vm3, %v540_v59, 0 }
 0x2dd   :  { %v3327_v46 = vpop.eup %3326 }
 0x2de   :  { %v215_v47 = vmul.f32 %v3327_v46, %v3640_v52 }
 0x2e0   :  { %v216_v48 = vpack.c.bf16 %v215_v47, %v215_v47 }
 0x2e2   :  { %2957 = vmatmul.mubr.msk.bf16.vlgmr.msra.gmra.mxu0 %vm161_vm2, %v216_v48 }
 0x2e3   :  { %2967 = vmatpush3.bf16.msra.mxu0 %v331_v49  ;;  %2968 = vmatprep.mubr.msk.bf16.mxu0 %vm3492_vm0, %v3491_v0  ;;  %v3282_v49 = vld [vmem:[#allocation5 + $0x18] sm:$0xff]  }
 0x2e4   :  { %2978 = vmatprep.subr.bf16.mxu0 %v3491_v0  ;;  %3045 = vmatpush3.bf16.msra.mxu1 %v3282_v49 }
 0x2e5   :  { %v3329_v14 = vpop.eup %3328  ;;  %3046 = vmatprep.subr.bf16.mxu1 %v3491_v0 }
 0x2e6   :  { %v323_v50 = vmul.f32 %v3329_v14, %v3644_v58 }
 0x2e8   :  { %v324_v53 = vpack.c.bf16 %v323_v50, %v323_v50 }
 0x2ea   :  { %2969 = vmatmul.mubr.msk.bf16.vlgmr.msra.gmra.mxu0 %vm161_vm2, %v324_v53 }
 0x2eb   :  { %2979 = vmatpush3.bf16.msra.mxu0 %v438_v54  ;;  %2980 = vmatprep.mubr.msk.bf16.mxu0 %vm3492_vm0, %v3491_v0  ;;  %v3283_v54 = vld [vmem:[#allocation5 + $0x10] sm:$0xff]  }
 0x2ec   :  { %2990 = vmatprep.subr.bf16.mxu0 %v3491_v0  ;;  %3047 = vmatpush3.bf16.msra.mxu1 %v3283_v54  ;;  %v2775_v54 = vld [vmem:[#allocation7 + $0x4] ss:$0 sm:$0xff] }
 0x2ed   :  { %3060 = vmatprep.subr.bf16.mxu1 %v3491_v0 }
 0x304   :  { %v428_v52 = vpop.xlane.xlu0 %427 }
 0x305   :  { %3330 = vrcp.f32 %v428_v52 }
 0x308   :  { %v535_v55 = vpop.xlane.xlu0 %534 }
 0x309   :  { %3332 = vrcp.f32 %v535_v55 }
 0x30c   :  { %v659_v56 = vpop.xlane.xlu0 %658  ;;  %v766_v63 = vpop.xlane.xlu1 %765 }
 0x30d   :  { %3334 = vrcp.f32 %v659_v56 }
 0x30e   :  { %3336 = vrcp.f32 %v766_v63 }
 0x310   :  { %v873_v57 = vpop.xlane.xlu0 %872  ;;  %v771_v12 = vpop.permute.xlu1 %770 }
 0x311   :  { %3338 = vrcp.f32 %v873_v57  ;;  %v776_v16 = vsel %vm222_vm3, %v771_v12, 0 }
 0x312   :  { %v3331_v58 = vpop.eup %3330 }
 0x313   :  { %v430_v60 = vmul.f32 %v3331_v58, %v3315_v31 }
 0x314   :  { %v980_v1 = vpop.xlane.xlu0 %979  ;;  %v878_v18 = vpop.permute.xlu1 %877 }
 0x315   :  { %v431_v61 = vpack.c.bf16 %v430_v60, %v430_v60  ;;  %3340 = vrcp.f32 %v980_v1  ;;  %v883_v21 = vsel %vm222_vm3, %v878_v18, 0 }
 0x316   :  { %v3333_v62 = vpop.eup %3332 }
 0x317   :  { %2981 = vmatmul.mubr.msk.bf16.vlgmr.msra.gmra.mxu0 %vm161_vm2, %v431_v61  ;;  %v537_v5 = vmul.f32 %v3333_v62, %v3317_v33 }
 0x318   :  { %2991 = vmatpush3.bf16.msra.mxu0 %v545_v2  ;;  %2992 = vmatprep.mubr.msk.bf16.mxu0 %vm3492_vm0, %v3491_v0  ;;  %v664_v6 = vpop.permute.xlu0 %663  ;;  %v985_v23 = vpop.permute.xlu1 %984 }
 0x319   :  { %3002 = vmatprep.subr.bf16.mxu0 %v3491_v0  ;;  %v538_v7 = vpack.c.bf16 %v537_v5, %v537_v5  ;;  %v669_v9 = vsel %vm222_vm3, %v664_v6, 0  ;;  %v990_v26 = vsel %vm222_vm3, %v985_v23, 0 }
 0x31a   :  { %v3335_v8 = vpop.eup %3334 }
 0x31b   :  { %v661_v11 = vmul.f32 %v3335_v8, %v3653_v34  ;;  %v3337_v15 = vpop.eup %3336 }
 0x31c   :  { %v768_v17 = vmul.f32 %v3337_v15, %v3656_v36 }
 0x31d   :  { %v662_v13 = vpack.c.bf16 %v661_v11, %v661_v11 }
 0x31e   :  { %v769_v19 = vpack.c.bf16 %v768_v17, %v768_v17  ;;  %v3339_v20 = vpop.eup %3338 }
 0x31f   :  { %2993 = vmatmul.mubr.msk.bf16.vlgmr.msra.gmra.mxu0 %vm161_vm2, %v538_v7  ;;  %v875_v22 = vmul.f32 %v3339_v20, %v3662_v39 }
 0x320   :  { %3003 = vmatpush3.bf16.msra.mxu0 %v669_v9  ;;  %3004 = vmatprep.mubr.msk.bf16.mxu0 %vm3492_vm0, %v3491_v0 }
 0x321   :  { %3014 = vmatprep.subr.bf16.mxu0 %v3491_v0  ;;  %v876_v24 = vpack.c.bf16 %v875_v22, %v875_v22 }
 0x322   :  { %v3341_v25 = vpop.eup %3340 }
 0x323   :  { %v982_v27 = vmul.f32 %v3341_v25, %v3666_v41 }
 0x325   :  { %v983_v10 = vpack.c.bf16 %v982_v27, %v982_v27 }
 0x327   :  { %3005 = vmatmul.mubr.msk.bf16.vlgmr.msra.gmra.mxu0 %vm161_vm2, %v662_v13 }
 0x328   :  { %3015 = vmatpush3.bf16.msra.mxu0 %v776_v16  ;;  %3016 = vmatprep.mubr.msk.bf16.mxu0 %vm3492_vm0, %v3491_v0 }
 0x329   :  { %3026 = vmatprep.subr.bf16.mxu0 %v3491_v0 }
 0x32f   :  { %3017 = vmatmul.mubr.msk.bf16.vlgmr.msra.gmra.mxu0 %vm161_vm2, %v769_v19 }
 0x330   :  { %3027 = vmatpush3.bf16.msra.mxu0 %v883_v21  ;;  %3028 = vmatprep.mubr.msk.bf16.mxu0 %vm3492_vm0, %v3491_v0  ;;  %v2771_v21 = vld [vmem:[#allocation7 + $0x1] ss:$0 sm:$0xff] }
 0x331   :  { %3038 = vmatprep.subr.bf16.mxu0 %v3491_v0 }
 0x337   :  { %3029 = vmatmul.mubr.msk.bf16.vlgmr.msra.gmra.mxu0 %vm161_vm2, %v876_v24 }
 0x338   :  { %3039 = vmatpush3.bf16.msra.mxu0 %v990_v26  ;;  %3040 = vmatprep.mubr.msk.bf16.mxu0 %vm3492_vm0, %v3491_v0 }
 0x339   :  { %3052 = vmatprep.subr.bf16.mxu0 %v3491_v0 }
 0x33f   :  { %3041 = vmatmul.mubr.msk.bf16.vlgmr.msra.gmra.mxu0 %vm161_vm2, %v983_v10 }
 0x340   :  { %3056 = vmatprep.mubr.msk.bf16.mxu0 %vm3492_vm0, %v3491_v0 }
 0x3a2   :  { %v260_v28 = vpop.f32.mrf.mxu0 }
 0x3a4   :  { %v2958_v29 = vpop.f32.mrf.mxu0 }
 0x3a6   :  { %v263_v30 = vpop.f32.mrf.mxu0 }
 0x3a8   :  { %v2959_v31 = vpop.f32.mrf.mxu0 }
 0x3aa   :  { %v367_v32 = vpop.f32.mrf.mxu0 }
 0x3ac   :  { %v2970_v33 = vpop.f32.mrf.mxu0 }
 0x3ae   :  { %v370_v34 = vpop.f32.mrf.mxu0 }
 0x3b0   :  { %v2971_v35 = vpop.f32.mrf.mxu0 }
 0x3d7   :  { %v474_v36 = vpop.f32.mrf.mxu0 }
 0x3d9   :  { %v2982_v37 = vpop.f32.mrf.mxu0 }
 0x3db   :  { %v477_v38 = vpop.f32.mrf.mxu0 }
 0x3dd   :  { %v2983_v39 = vpop.f32.mrf.mxu0 }
 0x3df   :  { %v581_v40 = vpop.f32.mrf.mxu0 }
 0x3e1   :  { %v2994_v41 = vpop.f32.mrf.mxu0 }
 0x3e2   :  { %v3286_v41 = vld [vmem:[#allocation5 + $0x68] sm:$0xff]  }
 0x3e3   :  { %v584_v42 = vpop.f32.mrf.mxu0 }
 0x3e4   :  { %v3287_v42 = vld [vmem:[#allocation5 + $0x60] sm:$0xff]  }
 0x3e5   :  { %v2995_v43 = vpop.f32.mrf.mxu0 }
 0x3e6   :  { %v3288_v43 = vld [vmem:[#allocation5 + $0x58] sm:$0xff]  }
 0x3e7   :  { %v705_v44 = vpop.f32.mrf.mxu0 }
 0x3e9   :  { %v3006_v45 = vpop.f32.mrf.mxu0 }
 0x3ea   :  { %v3290_v45 = vld [vmem:[#allocation5 + $0x48] sm:$0xff]  }
 0x3eb   :  { %v708_v46 = vpop.f32.mrf.mxu0 }
 0x3ed   :  { %v3007_v47 = vpop.f32.mrf.mxu0 }
 0x3ef   :  { %v812_v48 = vpop.f32.mrf.mxu0 }
 0x3f0   :  { %v3250_v14 = vpack.i.bf16 %v812_v48, %v367_v32 }
 0x3f1   :  { %v3018_v50 = vpop.f32.mrf.mxu0 }
 0x3f2   :  { %3251 = vrot.lane.b32.xlu1 %v3250_v14, %s3489_s23 }
 0x3f3   :  { %v815_v51 = vpop.f32.mrf.mxu0 }
 0x3f5   :  { %v3019_v53 = vpop.f32.mrf.mxu0 }
 0x3f7   :  { %v919_v52 = vpop.f32.mrf.mxu0 }
 0x3f8   :  { %v3255_v55 = vpack.i.bf16 %v919_v52, %v474_v36 }
 0x3f9   :  { %v3030_v56 = vpop.f32.mrf.mxu0 }
 0x3fa   :  { %3256 = vrot.lane.b32.xlu1 %v3255_v55, %s3503_s11 }
 0x3fb   :  { %v922_v57 = vpop.f32.mrf.mxu0 }
 0x3fc   :  { %v2776_v57 = vld [vmem:[#allocation7 + $0x5] ss:$0 sm:$0xff] }
 0x3fd   :  { %v3031_v58 = vpop.f32.mrf.mxu0 }
 0x3ff   :  { %v1026_v59 = vpop.f32.mrf.mxu0 }
 0x400   :  { %v3260_v60 = vpack.i.bf16 %v1026_v59, %v581_v40  ;;  %v3284_v40 = vld [vmem:[#allocation5 + $0x28] sm:$0xff]  }
 0x401   :  { %v3042_v61 = vpop.f32.mrf.mxu0  ;;  %3053 = vmatpush3.bf16.msra.mxu0 %v3284_v40 }
 0x402   :  { %3261 = vrot.lane.b32.xlu0 %v3260_v60, %s3504_s12  ;;  %3054 = vmatprep.subr.bf16.mxu0 %v3491_v0 }
 0x403   :  { %v1029_v62 = vpop.f32.mrf.mxu0 }
 0x404   :  { %v3291_v62 = vld [vmem:[#allocation5 + $0x40] sm:$0xff]  }
 0x405   :  { %v3043_v63 = vpop.f32.mrf.mxu0 }
 0x406   :  { %v3292_v63 = vld [vmem:[#allocation5 + $0x38] sm:$0xff]  }
 0x464   :  { %v3252_v1 = vpop.permute.xlu1 %3251 }
 0x465   :  { %v3254_v5 = vunpack.i.h.bf16 %v3252_v1  ;;  %v3253_v6 = vunpack.i.l.bf16 %v3252_v1  ;;  %v3293_v1 = vld [vmem:[#allocation5 + $0x30] sm:$0xff]  }
 0x467   :  { %v1044_v11 = vsel %vm161_vm2, %v705_v44, %v3254_v5  ;;  %v599_v12 = vsel %vm161_vm2, %v260_v28, %v3253_v6  ;;  %v3289_v44 = vld [vmem:[#allocation5 + $0x50] sm:$0xff]  }
 0x46c   :  { %v3257_v2 = vpop.permute.xlu1 %3256 }
 0x46d   :  { %v3259_v7 = vunpack.i.h.bf16 %v3257_v2  ;;  %v3258_v8 = vunpack.i.l.bf16 %v3257_v2  ;;  %v2777_v2 = vld [vmem:[#allocation7 + $0x2] ss:$0 sm:$0xff] }
 0x46f   :  { %v1045_v16 = vsel %vm600_vm4, %v1044_v11, %v3259_v7  ;;  %v601_v17 = vsel %vm600_vm4, %v599_v12, %v3258_v8 }
 0x474   :  { %v3262_v9 = vpop.permute.xlu0 %3261 }
 0x475   :  { %v3264_v13 = vunpack.i.h.bf16 %v3262_v9  ;;  %v3263_v15 = vunpack.i.l.bf16 %v3262_v9 }
 0x477   :  { %v1046_v18 = vsel %vm602_vm5, %v1045_v16, %v3264_v13  ;;  %v603_v19 = vsel %vm602_vm5, %v601_v17, %v3263_v15  ;;  %v2781_v16 = vld [vmem:[#allocation7 + $0x3] ss:$0 sm:$0xff] }
 0x478   :  { %v1047_v20 = vpack.c.bf16 %v1046_v18, %v603_v19 }
 0x47a   :  { %3049 = vmatmul.mubr.msk.bf16.vlgmr.msra.gmra.mxu1 %vm112_vm1, %v1047_v20 }
 0x47b   :  { %3076 = vmatprep.mubr.msk.bf16.mxu1 %vm3492_vm0, %v3491_v0  ;;  %3061 = vmatpush3.bf16.msra.mxu1 %v3286_v41 }
 0x47c   :  { %3062 = vmatprep.subr.bf16.mxu1 %v3491_v0 }
 0x47f   :  { %3063 = vmatpush3.bf16.msra.mxu1 %v3287_v42 }
 0x480   :  { %3064 = vmatprep.subr.bf16.mxu1 %v3491_v0 }
 0x483   :  { %3065 = vmatpush3.bf16.msra.mxu1 %v3288_v43 }
 0x484   :  { %3066 = vmatprep.subr.bf16.mxu1 %v3491_v0 }
 0x487   :  { %3067 = vmatpush3.bf16.msra.mxu1 %v3289_v44  ;;  %v2790_v44 = vld [vmem:[#allocation7 + $0x6] ss:$0 sm:$0xff] }
 0x488   :  { %3068 = vmatprep.subr.bf16.mxu1 %v3491_v0 }
 0x48b   :  { %3069 = vmatpush3.bf16.msra.mxu1 %v3290_v45 }
 0x48c   :  { %3070 = vmatprep.subr.bf16.mxu1 %v3491_v0 }
 0x48f   :  { %3071 = vmatpush3.bf16.msra.mxu1 %v3291_v62 }
 0x490   :  { %3072 = vmatprep.subr.bf16.mxu1 %v3491_v0 }
 0x493   :  { %3073 = vmatpush3.bf16.msra.mxu1 %v3292_v63 }
 0x494   :  { %3074 = vmatprep.subr.bf16.mxu1 %v3491_v0 }
 0x497   :  { %3075 = vmatpush3.bf16.msra.mxu1 %v3293_v1 }
 0x498   :  { %3106 = vmatprep.subr.bf16.mxu1 %v3491_v0 }
 0x53a   :  { %v1101_v22 = vpop.f32.mrf.mxu1 }
 0x53b   :  { %v1102_v23 = vadd.f32 %v2771_v21, %v1101_v22 }
 0x53c   :  { %v3050_v24 = vpop.f32.mrf.mxu1 }
 0x53d   :  { %v1108_v25 = vadd.f32 %v1102_v23, %v3549_v3 }
 0x53e   :  { %v1104_v26 = vpop.f32.mrf.mxu1 }
 0x53f   :  { %v1105_v27 = vadd.f32 %v2771_v21, %v1104_v26  ;;  %v1110_v10 = vsel %vm112_vm1, %v1108_v25, 0.0 }
 0x540   :  { %1111 = vadd.xlane.f32.xlu1 %v1110_v10  ;;  %v3051_v28 = vpop.f32.mrf.mxu1 }
 0x541   :  { %v1109_v29 = vadd.f32 %v1105_v27, %v3551_v4  ;;  %v3285_v4 = vld [vmem:[#allocation5 + $0x20] sm:$0xff]  }
 0x542   :  { %3055 = vmatpush3.bf16.msra.mxu0 %v3285_v4 }
 0x543   :  { %v1113_v30 = vsel %vm112_vm1, %v1109_v29, 0.0  ;;  %3080 = vmatprep.subr.bf16.mxu0 %v3491_v0 }
 0x544   :  { %1114 = vadd.xlane.f32.xlu0 %v1113_v30 }
 0x5c9   :  { %v1112_v31 = vpop.xlane.xlu1 %1111 }
 0x5ca   :  { %v1117_v32 = vmul.f32 0.03125, %v1112_v31 }
 0x5cc   :  { %v1119_v33 = vsub.f32 %v1108_v25, %v1117_v32 }
 0x5cd   :  { %v1115_v34 = vpop.xlane.xlu0 %1114 }
 0x5ce   :  { %v1118_v35 = vmul.f32 0.03125, %v1115_v34  ;;  %v1121_v36 = vmul.f32 %v1119_v33, %v1119_v33 }
 0x5d0   :  { %v1120_v37 = vsub.f32 %v1109_v29, %v1118_v35  ;;  %v1123_v3 = vsel %vm112_vm1, %v1121_v36, 0.0  ;;  %v3294_v36 = vld [vmem:[#allocation5 + $0x78] sm:$0xff]  }
 0x5d1   :  { %1124 = vadd.xlane.f32.xlu0 %v1123_v3 }
 0x5d2   :  { %v1122_v38 = vmul.f32 %v1120_v37, %v1120_v37 }
 0x5d4   :  { %v1126_v39 = vsel %vm112_vm1, %v1122_v38, 0.0 }
 0x5d5   :  { %1127 = vadd.xlane.f32.xlu1 %v1126_v39 }
 0x65a   :  { %v1125_v46 = vpop.xlane.xlu0 %1124 }
 0x65b   :  { %v1129_v47 = vmul.f32 0.03125, %v1125_v46 }
 0x65d   :  { %v1131_v48 = vadd.f32 1e-05, %v1129_v47 }
 0x65e   :  { %v1128_v49 = vpop.xlane.xlu1 %1127 }
 0x65f   :  { %3342 = vrsqrt.f32 %v1131_v48  ;;  %v1130_v14 = vmul.f32 0.03125, %v1128_v49  ;;  %v2791_v48 = vld [vmem:[#allocation7 + $0x7] ss:$0 sm:$0xff] }
 0x661   :  { %v1132_v50 = vadd.f32 1e-05, %v1130_v14 }
 0x663   :  { %3344 = vrsqrt.f32 %v1132_v50 }
 0x66c   :  { %v3343_v51 = vpop.eup %3342 }
 0x66d   :  { %v1135_v53 = vmul.f32 %v3343_v51, %v1119_v33 }
 0x66f   :  { %v1141_v56 = vmul.f32 %v2775_v54, %v1135_v53  ;;  %v2792_v53 = vld [vmem:[#allocation7 + $0x8] ss:$0 sm:$0xff] }
 0x670   :  { %v3345_v52 = vpop.eup %3344 }
 0x671   :  { %v1136_v55 = vmul.f32 %v3345_v52, %v1120_v37  ;;  %v1147_v59 = vadd.f32 %v2776_v57, %v1141_v56  ;;  %v3295_v37 = vld [vmem:[#allocation5 + $0x70] sm:$0xff]  }
 0x673   :  { %v1142_v58 = vmul.f32 %v2775_v54, %v1136_v55 }
 0x675   :  { %v1148_v60 = vadd.f32 %v2776_v57, %v1142_v58 }
 0x677   :  { %v1149_v61 = vpack.c.bf16 %v1148_v60, %v1147_v59 }
 0x679   :  { %3057 = vmatmul.mubr.msk.bf16.vlgmr.msra.gmra.mxu0 %vm112_vm1, %v1149_v61 }
 0x67a   :  { %3084 = vmatprep.mubr.msk.bf16.mxu0 %vm3492_vm0, %v3491_v0  ;;  %3081 = vmatpush3.bf16.msra.mxu0 %v3294_v36 }
 0x67b   :  { %3082 = vmatprep.subr.bf16.mxu0 %v3491_v0 }
 0x67e   :  { %3083 = vmatpush3.bf16.msra.mxu0 %v3295_v37 }
 0x67f   :  { %3088 = vmatprep.subr.bf16.mxu0 %v3491_v0 }
 0x739   :  { %v1203_v5 = vpop.f32.mrf.mxu0 }
 0x73a   :  { %v1204_v7 = vadd.f32 %v2777_v2, %v1203_v5 }
 0x73b   :  { %v3058_v6 = vpop.f32.mrf.mxu0 }
 0x73c   :  { %v1210_v12 = vmax.f32 %v1204_v7, 0.0 }
 0x73d   :  { %v1206_v8 = vpop.f32.mrf.mxu0 }
 0x73e   :  { %v1207_v9 = vadd.f32 %v2777_v2, %v1206_v8 }
 0x73f   :  { %v3059_v11 = vpop.f32.mrf.mxu0 }
 0x740   :  { %v1211_v13 = vmax.f32 %v1207_v9, 0.0 }
 0x742   :  { %v1212_v15 = vpack.c.bf16 %v1211_v13, %v1210_v12 }
 0x744   :  { %3077 = vmatmul.mubr.bf16.vlgmr.msra.gmra.mxu1 %v1212_v15 }
 0x745   :  { %3108 = vmatprep.mubr.msk.bf16.mxu1 %vm3492_vm0, %v3491_v0 }
 0x804   :  { %v1299_v17 = vpop.f32.mrf.mxu1 }
 0x805   :  { %v1300_v18 = vadd.f32 %v2781_v16, %v1299_v17 }
 0x806   :  { %v3078_v19 = vpop.f32.mrf.mxu1 }
 0x807   :  { %v1306_v20 = vadd.f32 %v1300_v18, %v1147_v59 }
 0x808   :  { %v1302_v21 = vpop.f32.mrf.mxu1 }
 0x809   :  { %v1303_v22 = vadd.f32 %v2781_v16, %v1302_v21  ;;  %v1308_v23 = vsel %vm112_vm1, %v1306_v20, 0.0 }
 0x80a   :  { %1309 = vadd.xlane.f32.xlu0 %v1308_v23  ;;  %v3079_v24 = vpop.f32.mrf.mxu1 }
 0x80b   :  { %v1307_v25 = vadd.f32 %v1303_v22, %v1148_v60 }
 0x80d   :  { %v1311_v26 = vsel %vm112_vm1, %v1307_v25, 0.0 }
 0x80e   :  { %1312 = vadd.xlane.f32.xlu1 %v1311_v26 }
 0x893   :  { %v1310_v27 = vpop.xlane.xlu0 %1309 }
 0x894   :  { %v1314_v10 = vmul.f32 0.03125, %v1310_v27 }
 0x896   :  { %v1316_v28 = vsub.f32 %v1306_v20, %v1314_v10 }
 0x897   :  { %v1313_v29 = vpop.xlane.xlu1 %1312 }
 0x898   :  { %v1315_v30 = vmul.f32 0.03125, %v1313_v29  ;;  %v1318_v31 = vmul.f32 %v1316_v28, %v1316_v28 }
 0x89a   :  { %v1317_v32 = vsub.f32 %v1307_v25, %v1315_v30  ;;  %v1320_v33 = vsel %vm112_vm1, %v1318_v31, 0.0 }
 0x89b   :  { %1321 = vadd.xlane.f32.xlu0 %v1320_v33 }
 0x89c   :  { %v1319_v34 = vmul.f32 %v1317_v32, %v1317_v32 }
 0x89e   :  { %v1323_v35 = vsel %vm112_vm1, %v1319_v34, 0.0 }
 0x89f   :  { %1324 = vadd.xlane.f32.xlu1 %v1323_v35 }
 0x924   :  { %v1322_v3 = vpop.xlane.xlu0 %1321 }
 0x925   :  { %v1326_v38 = vmul.f32 0.03125, %v1322_v3 }
 0x927   :  { %v1328_v39 = vadd.f32 1e-05, %v1326_v38 }
 0x928   :  { %v1325_v40 = vpop.xlane.xlu1 %1324 }
 0x929   :  { %3346 = vrsqrt.f32 %v1328_v39  ;;  %v1327_v4 = vmul.f32 0.03125, %v1325_v40 }
 0x92b   :  { %v1329_v41 = vadd.f32 1e-05, %v1327_v4 }
 0x92d   :  { %3348 = vrsqrt.f32 %v1329_v41 }
 0x936   :  { %v3347_v42 = vpop.eup %3346 }
 0x937   :  { %v1332_v43 = vmul.f32 %v3347_v42, %v1316_v28 }
 0x939   :  { %v1338_v47 = vmul.f32 %v2790_v44, %v1332_v43 }
 0x93a   :  { %v3349_v45 = vpop.eup %3348 }
 0x93b   :  { %v1333_v46 = vmul.f32 %v3349_v45, %v1317_v32  ;;  %v3763_v14 = vadd.f32 %v2791_v48, %v1338_v47 }
 0x93d   :  { %v1339_v49 = vmul.f32 %v2790_v44, %v1333_v46 }
 0x93f   :  { %v3765_v50 = vadd.f32 %v2791_v48, %v1339_v49 }
 0x941   :  { %v1382_v51 = vpack.c.bf16 %v3765_v50, %v3763_v14 }
 0x943   :  { %3085 = vmatmul.mubr.msk.bf16.vlgmr.msra.gmra.mxu0 %vm112_vm1, %v1382_v51 }
 0x944   :  { %3090 = vmatprep.mubr.msk.bf16.mxu0 %vm3492_vm0, %v3491_v0 }
 0xa03   :  { %v1436_v54 = vpop.f32.mrf.mxu0 }
 0xa04   :  { %v1437_v52 = vadd.f32 %v2792_v53, %v1436_v54 }
 0xa05   :  { %v3086_v55 = vpop.f32.mrf.mxu0 }
 0xa06   :  { %v3772_v56 = vpack.c.bf16 %v1437_v52, %v1437_v52 }
 0xa07   :  { %v1439_v57 = vpop.f32.mrf.mxu0 }
 0xa08   :  { %1445 = vrot.lane.b32.xlu0 %v3772_v56, %s3494_s2  ;;  %v1440_v59 = vadd.f32 %v2792_v53, %v1439_v57 }
 0xa09   :  { %v3087_v58 = vpop.f32.mrf.mxu0 }
 0xa0a   :  { %v3782_v60 = vpack.c.bf16 %v1440_v59, %v1440_v59 }
 0xa0c   :  { %1552 = vrot.lane.b32.xlu0 %v3772_v56, %s3496_s4 }
 0xa10   :  { %1659 = vrot.lane.b32.xlu0 %v3772_v56, %s3495_s30 }
 0xa14   :  { %1766 = vrot.lane.b32.xlu0 %v3772_v56, %s3497_s5 }
 0xa18   :  { %1888 = vrot.lane.b32.xlu0 %v3782_v60, %s3494_s2 }
 0xa1c   :  { %1993 = vrot.lane.b32.xlu0 %v3782_v60, %s3493_s0 }
 0xa20   :  { %2100 = vrot.lane.b32.xlu0 %v3782_v60, %s3498_s6 }
 0xa24   :  { %2207 = vrot.lane.b32.xlu0 %v3782_v60, %s3499_s7 }
 0xa28   :  { %1609 = vrot.lane.b32.xlu0 %v3772_v56, %s3500_s8 }
 0xa7a   :  { %v1446_v61 = vpop.permute.xlu0 %1445 }
 0xa7b   :  { %v1451_v62 = vsel %vm161_vm2, %v1446_v61, 0 }
 0xa7c   :  { %3089 = vmatpush3.bf16.xpose.msra.mxu0 %v1451_v62 }
 0xa7d   :  { %3094 = vmatprep.subr.bf16.mxu0 %v3491_v0 }
 0xa7e   :  { %v1553_v63 = vpop.permute.xlu0 %1552 }
 0xa7f   :  { %v1558_v27 = vsel %vm161_vm2, %v1553_v63, 0 }
 0xa82   :  { %v1660_v1 = vpop.permute.xlu0 %1659 }
 0xa83   :  { %3091 = vmatmul.mubr.msk.bf16.vlgmr.msra.gmra.mxu0 %vm161_vm2, %v3772_v56  ;;  %v1665_v28 = vsel %vm161_vm2, %v1660_v1, 0 }
 0xa84   :  { %3096 = vmatprep.mubr.msk.bf16.mxu0 %vm3492_vm0, %v3491_v0 }
 0xa86   :  { %v1767_v2 = vpop.permute.xlu0 %1766 }
 0xa87   :  { %v1772_v30 = vsel %vm161_vm2, %v1767_v2, 0 }
 0xa8a   :  { %v1889_v5 = vpop.permute.xlu0 %1888 }
 0xa8b   :  { %v1894_v32 = vsel %vm161_vm2, %v1889_v5, 0 }
 0xa8e   :  { %v3800_v6 = vpop.permute.xlu0 %1993 }
 0xa92   :  { %v3802_v7 = vpop.permute.xlu0 %2100 }
 0xa96   :  { %v3804_v8 = vpop.permute.xlu0 %2207 }
 0xa9a   :  { %v1610_v9 = vpop.permute.xlu0 %1609 }
 0xa9b   :  { %v1615_v11 = vsel %vm222_vm3, %v1610_v9, 0 }
 0xa9c   :  { %3107 = vmatpush3.bf16.msra.mxu1 %v1615_v11 }
 0xa9d   :  { %3118 = vmatprep.subr.bf16.mxu1 %v3491_v0 }
 0xb43   :  { %v1487_v12 = vpop.f32.mrf.mxu0 }
 0xb44   :  { %v1493_v13 = vmul.f32 0.35355338, %v1487_v12 }
 0xb45   :  { %v3092_v15 = vpop.f32.mrf.mxu0 }
 0xb46   :  { %v1494_v16 = vmul.f32 1.442695, %v1493_v13 }
 0xb47   :  { %v1490_v17 = vpop.f32.mrf.mxu0 }
 0xb48   :  { %3350 = vpow2.f32 %v1494_v16 }
 0xb49   :  { %v3093_v18 = vpop.f32.mrf.mxu0 }
 0xb55   :  { %v3351_v19 = vpop.eup %3350 }
 0xb56   :  { %v1496_v20 = vsel %vm161_vm2, %v3351_v19, 0.0 }
 0xb57   :  { %1497 = vadd.xlane.f32.xlu1 %v1496_v20 }
 0xb68   :  { %1502 = vrot.lane.b32.xlu1 %v3772_v56, %s3485_s15 }
 0xb6c   :  { %1550 = vrot.lane.b32.xlu1 %v3772_v56, %s3493_s0 }
 0xb70   :  { %1657 = vrot.lane.b32.xlu1 %v3772_v56, %s3498_s6 }
 0xb74   :  { %1764 = vrot.lane.b32.xlu1 %v3772_v56, %s3499_s7 }
 0xb78   :  { %1995 = vrot.lane.b32.xlu1 %v3782_v60, %s3496_s4 }
 0xb7c   :  { %2102 = vrot.lane.b32.xlu1 %v3782_v60, %s3495_s30 }
 0xb80   :  { %2209 = vrot.lane.b32.xlu1 %v3782_v60, %s3497_s5 }
 0xb84   :  { %1716 = vrot.lane.b32.xlu1 %v3772_v56, %s3501_s9 }
 0xbe0   :  { %v1498_v21 = vpop.xlane.xlu1 %1497 }
 0xbe1   :  { %3352 = vrcp.f32 %v1498_v21 }
 0xbe4   :  { %v1503_v22 = vpop.permute.xlu1 %1502 }
 0xbe5   :  { %v1508_v23 = vsel %vm222_vm3, %v1503_v22, 0 }
 0xbe6   :  { %3095 = vmatpush3.bf16.msra.mxu0 %v1508_v23 }
 0xbe7   :  { %3100 = vmatprep.subr.bf16.mxu0 %v3491_v0 }
 0xbe8   :  { %v1551_v10 = vpop.permute.xlu1 %1550 }
 0xbec   :  { %v1658_v29 = vpop.permute.xlu1 %1657 }
 0xbee   :  { %v3353_v24 = vpop.eup %3352 }
 0xbef   :  { %v1500_v25 = vmul.f32 %v3353_v24, %v3351_v19 }
 0xbf0   :  { %v1765_v31 = vpop.permute.xlu1 %1764 }
 0xbf1   :  { %v1501_v26 = vpack.c.bf16 %v1500_v25, %v1500_v25 }
 0xbf3   :  { %3097 = vmatmul.mubr.msk.bf16.vlgmr.msra.gmra.mxu0 %vm161_vm2, %v1501_v26 }
 0xbf4   :  { %3101 = vmatpush3.bf16.xpose.msra.mxu0 %v1558_v27  ;;  %3102 = vmatprep.mubr.msk.bf16.mxu0 %vm3492_vm0, %v3491_v0  ;;  %v1996_v33 = vpop.permute.xlu1 %1995 }
 0xbf5   :  { %3112 = vmatprep.subr.bf16.mxu0 %v3491_v0  ;;  %v2001_v34 = vsel %vm161_vm2, %v1996_v33, 0 }
 0xbf8   :  { %v2103_v35 = vpop.permute.xlu1 %2102 }
 0xbf9   :  { %v2108_v36 = vsel %vm161_vm2, %v2103_v35, 0 }
 0xbfb   :  { %3103 = vmatmul.mubr.msk.bf16.vlgmr.msra.gmra.mxu0 %vm161_vm2, %v1551_v10 }
 0xbfc   :  { %3113 = vmatpush3.bf16.xpose.msra.mxu0 %v1665_v28  ;;  %3114 = vmatprep.mubr.msk.bf16.mxu0 %vm3492_vm0, %v3491_v0  ;;  %v2210_v37 = vpop.permute.xlu1 %2209 }
 0xbfd   :  { %3124 = vmatprep.subr.bf16.mxu0 %v3491_v0  ;;  %v2215_v3 = vsel %vm161_vm2, %v2210_v37, 0 }
 0xc03   :  { %3115 = vmatmul.mubr.msk.bf16.vlgmr.msra.gmra.mxu0 %vm161_vm2, %v1658_v29 }
 0xc04   :  { %3125 = vmatpush3.bf16.xpose.msra.mxu0 %v1772_v30  ;;  %3126 = vmatprep.mubr.msk.bf16.mxu0 %vm3492_vm0, %v3491_v0 }
 0xc05   :  { %3136 = vmatprep.subr.bf16.mxu0 %v3491_v0 }
 0xc0b   :  { %3127 = vmatmul.mubr.msk.bf16.vlgmr.msra.gmra.mxu0 %vm161_vm2, %v1765_v31 }
 0xc0c   :  { %3137 = vmatpush3.bf16.xpose.msra.mxu0 %v1894_v32  ;;  %3138 = vmatprep.mubr.msk.bf16.mxu0 %vm3492_vm0, %v3491_v0 }
 0xc0d   :  { %3148 = vmatprep.subr.bf16.mxu0 %v3491_v0 }
 0xc13   :  { %3139 = vmatmul.mubr.msk.bf16.vlgmr.msra.gmra.mxu0 %vm161_vm2, %v3782_v60 }
 0xc14   :  { %3149 = vmatpush3.bf16.xpose.msra.mxu0 %v2001_v34  ;;  %3150 = vmatprep.mubr.msk.bf16.mxu0 %vm3492_vm0, %v3491_v0 }
 0xc15   :  { %3160 = vmatprep.subr.bf16.mxu0 %v3491_v0 }
 0xc1b   :  { %3151 = vmatmul.mubr.msk.bf16.vlgmr.msra.gmra.mxu0 %vm161_vm2, %v3800_v6 }
 0xc1c   :  { %3161 = vmatpush3.bf16.xpose.msra.mxu0 %v2108_v36  ;;  %3162 = vmatprep.mubr.msk.bf16.mxu0 %vm3492_vm0, %v3491_v0 }
 0xc1d   :  { %3172 = vmatprep.subr.bf16.mxu0 %v3491_v0 }
 0xc23   :  { %3163 = vmatmul.mubr.msk.bf16.vlgmr.msra.gmra.mxu0 %vm161_vm2, %v3802_v7 }
 0xc24   :  { %3173 = vmatpush3.bf16.xpose.msra.mxu0 %v2215_v3  ;;  %3174 = vmatprep.mubr.msk.bf16.mxu0 %vm3492_vm0, %v3491_v0 }
 0xc25   :  { %3184 = vmatprep.subr.bf16.mxu0 %v3491_v0 }
 0xc2b   :  { %3175 = vmatmul.mubr.msk.bf16.vlgmr.msra.gmra.mxu0 %vm161_vm2, %v3804_v8 }
 0xc2c   :  { %3188 = vmatprep.mubr.msk.bf16.mxu0 %vm3492_vm0, %v3491_v0 }
 0xcb3   :  { %v3869_v38 = vpop.f32.mrf.mxu0 }
 0xcb5   :  { %v3098_v39 = vpop.f32.mrf.mxu0 }
 0xcb6   :  { %v1717_v39 = vpop.permute.xlu1 %1716 }
 0xcb7   :  { %v1547_v40 = vpop.f32.mrf.mxu0 }
 0xcb9   :  { %v3099_v4 = vpop.f32.mrf.mxu0 }
 0xcbb   :  { %v1594_v41 = vpop.f32.mrf.mxu0 }
 0xcbc   :  { %v1600_v42 = vmul.f32 0.35355338, %v1594_v41 }
 0xcbd   :  { %v3104_v43 = vpop.f32.mrf.mxu0 }
 0xcbe   :  { %v1601_v44 = vmul.f32 1.442695, %v1600_v42 }
 0xcbf   :  { %v1597_v45 = vpop.f32.mrf.mxu0 }
 0xcc0   :  { %3354 = vpow2.f32 %v1601_v44  ;;  %v1722_v45 = vsel %vm222_vm3, %v1717_v39, 0 }
 0xcc1   :  { %v3105_v46 = vpop.f32.mrf.mxu0 }
 0xcc3   :  { %v1701_v47 = vpop.f32.mrf.mxu0 }
 0xcc4   :  { %v1707_v48 = vmul.f32 0.35355338, %v1701_v47 }
 0xcc5   :  { %v3116_v49 = vpop.f32.mrf.mxu0 }
 0xcc6   :  { %v1708_v51 = vmul.f32 1.442695, %v1707_v48 }
 0xcc7   :  { %v1704_v53 = vpop.f32.mrf.mxu0 }
 0xcc8   :  { %3356 = vpow2.f32 %v1708_v51 }
 0xcc9   :  { %v3117_v54 = vpop.f32.mrf.mxu0 }
 0xccb   :  { %v1808_v52 = vpop.f32.mrf.mxu0 }
 0xccc   :  { %v1814_v55 = vmul.f32 0.35355338, %v1808_v52 }
 0xccd   :  { %v3871_v57 = vpop.eup %3354  ;;  %v3128_v58 = vpop.f32.mrf.mxu0 }
 0xcce   :  { %v1815_v59 = vmul.f32 1.442695, %v1814_v55  ;;  %v1603_v61 = vsel %vm161_vm2, %v3871_v57, 0.0 }
 0xccf   :  { %1604 = vadd.xlane.f32.xlu1 %v1603_v61  ;;  %v1811_v62 = vpop.f32.mrf.mxu0 }
 0xcd0   :  { %3358 = vpow2.f32 %v1815_v59 }
 0xcd1   :  { %v3129_v63 = vpop.f32.mrf.mxu0 }
 0xcd3   :  { %v1930_v1 = vpop.f32.mrf.mxu0 }
 0xcd4   :  { %v1936_v21 = vmul.f32 0.35355338, %v1930_v1 }
 0xcd5   :  { %v3875_v2 = vpop.eup %3356  ;;  %v3140_v5 = vpop.f32.mrf.mxu0 }
 0xcd6   :  { %v1710_v6 = vsel %vm161_vm2, %v3875_v2, 0.0  ;;  %v1937_v24 = vmul.f32 1.442695, %v1936_v21 }
 0xcd7   :  { %1711 = vadd.xlane.f32.xlu0 %v1710_v6  ;;  %v1933_v7 = vpop.f32.mrf.mxu0 }
 0xcd8   :  { %3360 = vpow2.f32 %v1937_v24 }
 0xcd9   :  { %v3141_v8 = vpop.f32.mrf.mxu0 }
 0xcdb   :  { %v2037_v9 = vpop.f32.mrf.mxu0 }
 0xcdc   :  { %v2043_v25 = vmul.f32 0.35355338, %v2037_v9 }
 0xcdd   :  { %v3879_v11 = vpop.eup %3358  ;;  %v3152_v12 = vpop.f32.mrf.mxu0 }
 0xcde   :  { %v1817_v13 = vsel %vm161_vm2, %v3879_v11, 0.0  ;;  %v2044_v10 = vmul.f32 1.442695, %v2043_v25 }
 0xcdf   :  { %1818 = vadd.xlane.f32.xlu0 %v1817_v13  ;;  %v2040_v15 = vpop.f32.mrf.mxu0 }
 0xce0   :  { %1823 = vrot.lane.b32.xlu1 %v3772_v56, %s3502_s10  ;;  %3362 = vpow2.f32 %v2044_v10 }
 0xce1   :  { %v3153_v16 = vpop.f32.mrf.mxu0 }
 0xce3   :  { %v2144_v17 = vpop.f32.mrf.mxu0 }
 0xce4   :  { %v2150_v29 = vmul.f32 0.35355338, %v2144_v17 }
 0xce5   :  { %v3164_v18 = vpop.f32.mrf.mxu0  ;;  %v3361_v31 = vpop.eup %3360 }
 0xce6   :  { %v2151_v30 = vmul.f32 1.442695, %v2150_v29  ;;  %v1939_v32 = vsel %vm161_vm2, %v3361_v31, 0.0 }
 0xce7   :  { %v2147_v19 = vpop.f32.mrf.mxu0 }
 0xce9   :  { %v3165_v20 = vpop.f32.mrf.mxu0 }
 0xceb   :  { %v2251_v22 = vpop.f32.mrf.mxu0 }
 0xcec   :  { %v2257_v28 = vmul.f32 0.35355338, %v2251_v22 }
 0xced   :  { %v3176_v23 = vpop.f32.mrf.mxu0  ;;  %v3888_v33 = vpop.eup %3362 }
 0xcee   :  { %v2258_v56 = vmul.f32 1.442695, %v2257_v28  ;;  %v2046_v34 = vsel %vm161_vm2, %v3888_v33, 0.0 }
 0xcef   :  { %v2254_v26 = vpop.f32.mrf.mxu0 }
 0xcf0   :  { %3364 = vpow2.f32 %v2258_v56 }
 0xcf1   :  { %v3177_v27 = vpop.f32.mrf.mxu0  ;;  %3366 = vpow2.f32 %v2151_v30 }
 0xcf5   :  { %1945 = vrot.lane.b32.xlu0 %v3782_v60, %s3485_s15  ;;  %s3458_s15 = scalar_lea.vmem %s2739_s14, 256 }
 0xcf6   :  { %p3459_p1 = scmp.ne.s32.totalorder %s2739_s14, %s3458_s15  ;;  %p3464_p3 = scmp.lt.s32.totalorder %s3458_s15, %s3458_s15 }
 0xcf8   :  { %p3465_p4 = por %p3464_p3, %p3463_p2 }
 0xcfa   :  { %p3466_p5 = pnand %p3465_p4, %p3459_p1 }
 0xcfd   :  { %v3892_v35 = vpop.eup %3364 }
 0xcfe   :  { %v2260_v36 = vsel %vm161_vm2, %v3892_v35, 0.0  ;;  %v3896_v37 = vpop.eup %3366 }
 0xcff   :  { %v2153_v3 = vsel %vm161_vm2, %v3896_v37, 0.0 }
 0xd04   :  { %1940 = vadd.xlane.f32.xlu1 %v1939_v32 }
 0xd08   :  { %2047 = vadd.xlane.f32.xlu1 %v2046_v34 }
 0xd0c   :  { %2261 = vadd.xlane.f32.xlu1 %v2260_v36  ;;  %v3296_v36 = vld [vmem:[#allocation5 + $0x88] sm:$0xff]  }
 0xd0d   :  { %3185 = vmatpush3.bf16.msra.mxu0 %v3296_v36 }
 0xd0e   :  { %3186 = vmatprep.subr.bf16.mxu0 %v3491_v0 }
 0xd14   :  { %2154 = vadd.xlane.f32.xlu0 %v2153_v3 }
 0xd1d   :  { %2052 = vrot.lane.b32.xlu1 %v3782_v60, %s3500_s8 }
 0xd2a   :  { %2159 = vrot.lane.b32.xlu0 %v3782_v60, %s3501_s9 }
 0xd2e   :  { %2266 = vrot.lane.b32.xlu0 %v3782_v60, %s3502_s10 }
 0xd58   :  { %v1605_v40 = vpop.xlane.xlu1 %1604 }
 0xd59   :  { %3368 = vrcp.f32 %v1605_v40 }
 0xd5c   :  { %v1824_v47 = vpop.permute.xlu1 %1823 }
 0xd5d   :  { %v1829_v49 = vsel %vm222_vm3, %v1824_v47, 0 }
 0xd60   :  { %v1712_v4 = vpop.xlane.xlu0 %1711 }
 0xd61   :  { %3370 = vrcp.f32 %v1712_v4  ;;  %v3297_v4 = vld [vmem:[#allocation5 + $0x80] sm:$0xff]  }
 0xd62   :  { %3187 = vmatpush3.bf16.msra.mxu0 %v3297_v4  ;;  %v2816_v4 = vld [vmem:[#allocation7 + $0xc] ss:$0 sm:$0xff] }
 0xd63   :  { %3200 = vmatprep.subr.bf16.mxu0 %v3491_v0 }
 0xd66   :  { %v3369_v41 = vpop.eup %3368 }
 0xd67   :  { %v1607_v42 = vmul.f32 %v3369_v41, %v3871_v57 }
 0xd68   :  { %v1819_v43 = vpop.xlane.xlu0 %1818 }
 0xd69   :  { %3372 = vrcp.f32 %v1819_v43  ;;  %v1608_v44 = vpack.c.bf16 %v1607_v42, %v1607_v42 }
 0xd6b   :  { %3109 = vmatmul.mubr.msk.bf16.vlgmr.msra.gmra.mxu1 %vm161_vm2, %v1608_v44 }
 0xd6c   :  { %3119 = vmatpush3.bf16.msra.mxu1 %v1722_v45  ;;  %3120 = vmatprep.mubr.msk.bf16.mxu1 %vm3492_vm0, %v3491_v0  ;;  %v1946_v54 = vpop.permute.xlu0 %1945 }
 0xd6d   :  { %3130 = vmatprep.subr.bf16.mxu1 %v3491_v0  ;;  %v1951_v55 = vsel %vm222_vm3, %v1946_v54, 0 }
 0xd6e   :  { %v3371_v60 = vpop.eup %3370 }
 0xd6f   :  { %v1714_v46 = vmul.f32 %v3371_v60, %v3875_v2 }
 0xd71   :  { %v1715_v48 = vpack.c.bf16 %v1714_v46, %v1714_v46 }
 0xd73   :  { %3121 = vmatmul.mubr.msk.bf16.vlgmr.msra.gmra.mxu1 %vm161_vm2, %v1715_v48 }
 0xd74   :  { %3131 = vmatpush3.bf16.msra.mxu1 %v1829_v49  ;;  %3132 = vmatprep.mubr.msk.bf16.mxu1 %vm3492_vm0, %v3491_v0 }
 0xd75   :  { %3142 = vmatprep.subr.bf16.mxu1 %v3491_v0 }
 0xd76   :  { %v3373_v51 = vpop.eup %3372 }
 0xd77   :  { %v1821_v53 = vmul.f32 %v3373_v51, %v3879_v11 }
 0xd79   :  { %v1822_v52 = vpack.c.bf16 %v1821_v53, %v1821_v53 }
 0xd7b   :  { %3133 = vmatmul.mubr.msk.bf16.vlgmr.msra.gmra.mxu1 %vm161_vm2, %v1822_v52 }
 0xd7c   :  { %3143 = vmatpush3.bf16.msra.mxu1 %v1951_v55  ;;  %3144 = vmatprep.mubr.msk.bf16.mxu1 %vm3492_vm0, %v3491_v0 }
 0xd7d   :  { %3154 = vmatprep.subr.bf16.mxu1 %v3491_v0 }
 0xd8d   :  { %v1941_v57 = vpop.xlane.xlu1 %1940 }
 0xd8e   :  { %3374 = vrcp.f32 %v1941_v57 }
 0xd91   :  { %v2048_v58 = vpop.xlane.xlu1 %2047 }
 0xd92   :  { %3376 = vrcp.f32 %v2048_v58 }
 0xd95   :  { %v2262_v59 = vpop.xlane.xlu1 %2261 }
 0xd99   :  { %v2053_v63 = vpop.permute.xlu1 %2052 }
 0xd9a   :  { %v2058_v6 = vsel %vm222_vm3, %v2053_v63, 0 }
 0xd9b   :  { %v3375_v61 = vpop.eup %3374 }
 0xd9c   :  { %v1943_v62 = vmul.f32 %v3375_v61, %v3361_v31 }
 0xd9d   :  { %v2155_v1 = vpop.xlane.xlu0 %2154 }
 0xd9e   :  { %3378 = vrcp.f32 %v2155_v1  ;;  %v1944_v2 = vpack.c.bf16 %v1943_v62, %v1943_v62 }
 0xd9f   :  { %v3377_v5 = vpop.eup %3376  ;;  %3380 = vrcp.f32 %v2262_v59 }
 0xda0   :  { %3145 = vmatmul.mubr.msk.bf16.vlgmr.msra.gmra.mxu1 %vm161_vm2, %v1944_v2  ;;  %v2050_v7 = vmul.f32 %v3377_v5, %v3888_v33 }
 0xda1   :  { %3155 = vmatpush3.bf16.msra.mxu1 %v2058_v6  ;;  %3156 = vmatprep.mubr.msk.bf16.mxu1 %vm3492_vm0, %v3491_v0  ;;  %v2160_v8 = vpop.permute.xlu0 %2159 }
 0xda2   :  { %3166 = vmatprep.subr.bf16.mxu1 %v3491_v0  ;;  %v2051_v9 = vpack.c.bf16 %v2050_v7, %v2050_v7  ;;  %v2165_v11 = vsel %vm222_vm3, %v2160_v8, 0  ;;  %v2812_v8 = vld [vmem:[#allocation7 + $0x9] ss:$0 sm:$0xff] }
 0xda5   :  { %v2267_v15 = vpop.permute.xlu0 %2266 }
 0xda6   :  { %v2272_v18 = vsel %vm222_vm3, %v2267_v15, 0 }
 0xda8   :  { %3157 = vmatmul.mubr.msk.bf16.vlgmr.msra.gmra.mxu1 %vm161_vm2, %v2051_v9 }
 0xda9   :  { %3167 = vmatpush3.bf16.msra.mxu1 %v2165_v11  ;;  %3168 = vmatprep.mubr.msk.bf16.mxu1 %vm3492_vm0, %v3491_v0 }
 0xdaa   :  { %3178 = vmatprep.subr.bf16.mxu1 %v3491_v0 }
 0xdab   :  { %v3379_v12 = vpop.eup %3378 }
 0xdac   :  { %v2157_v13 = vmul.f32 %v3379_v12, %v3896_v37  ;;  %v3381_v17 = vpop.eup %3380 }
 0xdad   :  { %v2264_v19 = vmul.f32 %v3381_v17, %v3892_v35 }
 0xdae   :  { %v2158_v16 = vpack.c.bf16 %v2157_v13, %v2157_v13 }
 0xdaf   :  { %v2265_v20 = vpack.c.bf16 %v2264_v19, %v2264_v19 }
 0xdb0   :  { %3169 = vmatmul.mubr.msk.bf16.vlgmr.msra.gmra.mxu1 %vm161_vm2, %v2158_v16 }
 0xdb1   :  { %3179 = vmatpush3.bf16.msra.mxu1 %v2272_v18  ;;  %3180 = vmatprep.mubr.msk.bf16.mxu1 %vm3492_vm0, %v3491_v0 }
 0xdb2   :  { %3192 = vmatprep.subr.bf16.mxu1 %v3491_v0 }
 0xdb8   :  { %3181 = vmatmul.mubr.msk.bf16.vlgmr.msra.gmra.mxu1 %vm161_vm2, %v2265_v20 }
 0xdb9   :  { %3196 = vmatprep.mubr.msk.bf16.mxu1 %vm3492_vm0, %v3491_v0 }
 0xe2b   :  { %v1651_v21 = vpop.f32.mrf.mxu1 }
 0xe2d   :  { %v3110_v22 = vpop.f32.mrf.mxu1 }
 0xe2f   :  { %v1654_v23 = vpop.f32.mrf.mxu1 }
 0xe31   :  { %v3111_v24 = vpop.f32.mrf.mxu1 }
 0xe33   :  { %v1758_v25 = vpop.f32.mrf.mxu1 }
 0xe35   :  { %v3122_v26 = vpop.f32.mrf.mxu1 }
 0xe37   :  { %v1761_v27 = vpop.f32.mrf.mxu1 }
 0xe39   :  { %v3123_v10 = vpop.f32.mrf.mxu1 }
 0xe3b   :  { %v1865_v28 = vpop.f32.mrf.mxu1 }
 0xe3d   :  { %v3134_v56 = vpop.f32.mrf.mxu1 }
 0xe3e   :  { %v3300_v56 = vld [vmem:[#allocation5 + $0xd8] sm:$0xff]  }
 0xe3f   :  { %v1868_v29 = vpop.f32.mrf.mxu1 }
 0xe40   :  { %v3301_v29 = vld [vmem:[#allocation5 + $0xd0] sm:$0xff]  }
 0xe41   :  { %v3135_v30 = vpop.f32.mrf.mxu1 }
 0xe42   :  { %v3302_v30 = vld [vmem:[#allocation5 + $0xc8] sm:$0xff]  }
 0xe60   :  { %v1987_v31 = vpop.f32.mrf.mxu1 }
 0xe62   :  { %v3146_v32 = vpop.f32.mrf.mxu1 }
 0xe63   :  { %v3304_v32 = vld [vmem:[#allocation5 + $0xb8] sm:$0xff]  }
 0xe64   :  { %v1990_v33 = vpop.f32.mrf.mxu1 }
 0xe66   :  { %v3147_v34 = vpop.f32.mrf.mxu1 }
 0xe68   :  { %v2094_v35 = vpop.f32.mrf.mxu1 }
 0xe69   :  { %v3265_v37 = vpack.i.bf16 %v2094_v35, %v1651_v21 }
 0xe6a   :  { %v3158_v3 = vpop.f32.mrf.mxu1 }
 0xe6b   :  { %3266 = vrot.lane.b32.xlu1 %v3265_v37, %s3489_s23 }
 0xe6c   :  { %v2097_v39 = vpop.f32.mrf.mxu1 }
 0xe6e   :  { %v3159_v40 = vpop.f32.mrf.mxu1 }
 0xe70   :  { %v2201_v41 = vpop.f32.mrf.mxu1 }
 0xe71   :  { %v3270_v42 = vpack.i.bf16 %v2201_v41, %v1758_v25 }
 0xe72   :  { %v3170_v43 = vpop.f32.mrf.mxu1 }
 0xe73   :  { %3271 = vrot.lane.b32.xlu0 %v3270_v42, %s3503_s11 }
 0xe74   :  { %v2204_v44 = vpop.f32.mrf.mxu1 }
 0xe75   :  { %v2817_v44 = vld [vmem:[#allocation7 + $0xd] ss:$0 sm:$0xff] }
 0xe76   :  { %v3171_v45 = vpop.f32.mrf.mxu1 }
 0xe78   :  { %v2308_v60 = vpop.f32.mrf.mxu1 }
 0xe79   :  { %v3275_v46 = vpack.i.bf16 %v2308_v60, %v1865_v28  ;;  %v3298_v28 = vld [vmem:[#allocation5 + $0x98] sm:$0xff]  }
 0xe7a   :  { %v3182_v47 = vpop.f32.mrf.mxu1  ;;  %3193 = vmatpush3.bf16.msra.mxu1 %v3298_v28 }
 0xe7b   :  { %3276 = vrot.lane.b32.xlu1 %v3275_v46, %s3504_s12  ;;  %3194 = vmatprep.subr.bf16.mxu1 %v3491_v0 }
 0xe7c   :  { %v2311_v48 = vpop.f32.mrf.mxu1 }
 0xe7d   :  { %v3305_v48 = vld [vmem:[#allocation5 + $0xb0] sm:$0xff]  }
 0xe7e   :  { %v3183_v49 = vpop.f32.mrf.mxu1 }
 0xe7f   :  { %v3306_v49 = vld [vmem:[#allocation5 + $0xa8] sm:$0xff]  }
 0xedd   :  { %v3267_v51 = vpop.permute.xlu1 %3266 }
 0xede   :  { %v3269_v54 = vunpack.i.h.bf16 %v3267_v51  ;;  %v3268_v52 = vunpack.i.l.bf16 %v3267_v51  ;;  %v3307_v51 = vld [vmem:[#allocation5 + $0xa0] sm:$0xff]  }
 0xee0   :  { %v2326_v59 = vsel %vm161_vm2, %v1987_v31, %v3269_v54  ;;  %v1883_v61 = vsel %vm161_vm2, %v3869_v38, %v3268_v52  ;;  %v3303_v31 = vld [vmem:[#allocation5 + $0xc0] sm:$0xff]  }
 0xee5   :  { %v3272_v53 = vpop.permute.xlu0 %3271 }
 0xee6   :  { %v3274_v55 = vunpack.i.h.bf16 %v3272_v53  ;;  %v3273_v57 = vunpack.i.l.bf16 %v3272_v53  ;;  %v2818_v53 = vld [vmem:[#allocation7 + $0xa] ss:$0 sm:$0xff] }
 0xee8   :  { %v2327_v1 = vsel %vm600_vm4, %v2326_v59, %v3274_v55  ;;  %v1884_v2 = vsel %vm600_vm4, %v1883_v61, %v3273_v57 }
 0xeed   :  { %v3277_v58 = vpop.permute.xlu1 %3276 }
 0xeee   :  { %v3279_v62 = vunpack.i.h.bf16 %v3277_v58  ;;  %v3278_v63 = vunpack.i.l.bf16 %v3277_v58 }
 0xef0   :  { %v2328_v5 = vsel %vm602_vm5, %v2327_v1, %v3279_v62  ;;  %v1885_v6 = vsel %vm602_vm5, %v1884_v2, %v3278_v63  ;;  %v2822_v1 = vld [vmem:[#allocation7 + $0xb] ss:$0 sm:$0xff] }
 0xef1   :  { %v2329_v7 = vpack.c.bf16 %v2328_v5, %v1885_v6 }
 0xef3   :  { %3189 = vmatmul.mubr.msk.bf16.vlgmr.msra.gmra.mxu0 %vm112_vm1, %v2329_v7 }
 0xef4   :  { %3216 = vmatprep.mubr.msk.bf16.mxu0 %vm3492_vm0, %v3491_v0  ;;  %3201 = vmatpush3.bf16.msra.mxu0 %v3300_v56 }
 0xef5   :  { %3202 = vmatprep.subr.bf16.mxu0 %v3491_v0 }
 0xef8   :  { %3203 = vmatpush3.bf16.msra.mxu0 %v3301_v29 }
 0xef9   :  { %3204 = vmatprep.subr.bf16.mxu0 %v3491_v0 }
 0xefc   :  { %3205 = vmatpush3.bf16.msra.mxu0 %v3302_v30 }
 0xefd   :  { %3206 = vmatprep.subr.bf16.mxu0 %v3491_v0 }
 0xf00   :  { %3207 = vmatpush3.bf16.msra.mxu0 %v3303_v31  ;;  %v2831_v31 = vld [vmem:[#allocation7 + $0xe] ss:$0 sm:$0xff] }
 0xf01   :  { %3208 = vmatprep.subr.bf16.mxu0 %v3491_v0 }
 0xf04   :  { %3209 = vmatpush3.bf16.msra.mxu0 %v3304_v32 }
 0xf05   :  { %3210 = vmatprep.subr.bf16.mxu0 %v3491_v0 }
 0xf08   :  { %3211 = vmatpush3.bf16.msra.mxu0 %v3305_v48 }
 0xf09   :  { %3212 = vmatprep.subr.bf16.mxu0 %v3491_v0 }
 0xf0c   :  { %3213 = vmatpush3.bf16.msra.mxu0 %v3306_v49 }
 0xf0d   :  { %3214 = vmatprep.subr.bf16.mxu0 %v3491_v0 }
 0xf10   :  { %3215 = vmatpush3.bf16.msra.mxu0 %v3307_v51 }
 0xfb3   :  { %v2383_v9 = vpop.f32.mrf.mxu0 }
 0xfb4   :  { %v2384_v11 = vadd.f32 %v2812_v8, %v2383_v9 }
 0xfb5   :  { %v3190_v38 = vpop.f32.mrf.mxu0 }
 0xfb6   :  { %v2390_v12 = vadd.f32 %v2384_v11, %v3763_v14 }
 0xfb7   :  { %v2386_v13 = vpop.f32.mrf.mxu0 }
 0xfb8   :  { %v2387_v15 = vadd.f32 %v2812_v8, %v2386_v13  ;;  %v2392_v16 = vsel %vm112_vm1, %v2390_v12, 0.0 }
 0xfb9   :  { %2393 = vadd.xlane.f32.xlu0 %v2392_v16  ;;  %v3191_v17 = vpop.f32.mrf.mxu0 }
 0xfba   :  { %v2391_v18 = vadd.f32 %v2387_v15, %v3765_v50  ;;  %v3299_v50 = vld [vmem:[#allocation5 + $0x90] sm:$0xff]  }
 0xfbb   :  { %3195 = vmatpush3.bf16.msra.mxu1 %v3299_v50 }
 0xfbc   :  { %v2395_v19 = vsel %vm112_vm1, %v2391_v18, 0.0  ;;  %3220 = vmatprep.subr.bf16.mxu1 %v3491_v0 }
 0xfbd   :  { %2396 = vadd.xlane.f32.xlu1 %v2395_v19 }
0x1042   :  { %v2394_v20 = vpop.xlane.xlu0 %2393 }
0x1043   :  { %v2398_v21 = vmul.f32 0.03125, %v2394_v20 }
0x1045   :  { %v2400_v22 = vsub.f32 %v2390_v12, %v2398_v21 }
0x1046   :  { %v2397_v23 = vpop.xlane.xlu1 %2396 }
0x1047   :  { %v2399_v24 = vmul.f32 0.03125, %v2397_v23  ;;  %v2402_v25 = vmul.f32 %v2400_v22, %v2400_v22 }
0x1049   :  { %v2401_v26 = vsub.f32 %v2391_v18, %v2399_v24  ;;  %v2404_v14 = vsel %vm112_vm1, %v2402_v25, 0.0  ;;  %v3308_v25 = vld [vmem:[#allocation5 + $0xe8] sm:$0xff]  }
0x104a   :  { %2405 = vadd.xlane.f32.xlu0 %v2404_v14 }
0x104b   :  { %v2403_v27 = vmul.f32 %v2401_v26, %v2401_v26 }
0x104d   :  { %v2407_v10 = vsel %vm112_vm1, %v2403_v27, 0.0 }
0x104e   :  { %2408 = vadd.xlane.f32.xlu0 %v2407_v10 }
0x10d3   :  { %v2406_v33 = vpop.xlane.xlu0 %2405 }
0x10d4   :  { %v2410_v34 = vmul.f32 0.03125, %v2406_v33 }
0x10d6   :  { %v2412_v35 = vadd.f32 1e-05, %v2410_v34 }
0x10d7   :  { %v2409_v36 = vpop.xlane.xlu0 %2408 }
0x10d8   :  { %3382 = vrsqrt.f32 %v2412_v35  ;;  %v2411_v37 = vmul.f32 0.03125, %v2409_v36  ;;  %v2832_v35 = vld [vmem:[#allocation7 + $0xf] ss:$0 sm:$0xff] }
0x10da   :  { %v2413_v3 = vadd.f32 1e-05, %v2411_v37 }
0x10dc   :  { %3384 = vrsqrt.f32 %v2413_v3 }
0x10e5   :  { %v3383_v39 = vpop.eup %3382 }
0x10e6   :  { %v2416_v40 = vmul.f32 %v3383_v39, %v2400_v22  ;;  %v2833_v39 = vld [vmem:[#allocation7 + $0x10] ss:$0 sm:$0xff] }
0x10e8   :  { %v2422_v43 = vmul.f32 %v2816_v4, %v2416_v40 }
0x10e9   :  { %v3385_v41 = vpop.eup %3384 }
0x10ea   :  { %v2417_v42 = vmul.f32 %v3385_v41, %v2401_v26  ;;  %v2428_v60 = vadd.f32 %v2817_v44, %v2422_v43  ;;  %v3309_v26 = vld [vmem:[#allocation5 + $0xe0] sm:$0xff]  }
0x10ec   :  { %v2423_v45 = vmul.f32 %v2816_v4, %v2417_v42 }
0x10ee   :  { %v2429_v46 = vadd.f32 %v2817_v44, %v2423_v45 }
0x10f0   :  { %v2430_v47 = vpack.c.bf16 %v2429_v46, %v2428_v60 }
0x10f2   :  { %3197 = vmatmul.mubr.msk.bf16.vlgmr.msra.gmra.mxu1 %vm112_vm1, %v2430_v47 }
0x10f3   :  { %3224 = vmatprep.mubr.msk.bf16.mxu1 %vm3492_vm0, %v3491_v0  ;;  %3221 = vmatpush3.bf16.msra.mxu1 %v3308_v25 }
0x10f4   :  { %3222 = vmatprep.subr.bf16.mxu1 %v3491_v0 }
0x10f7   :  { %3223 = vmatpush3.bf16.msra.mxu1 %v3309_v26 }
0x11b2   :  { %v2484_v54 = vpop.f32.mrf.mxu1 }
0x11b3   :  { %v2485_v55 = vadd.f32 %v2818_v53, %v2484_v54 }
0x11b4   :  { %v3198_v52 = vpop.f32.mrf.mxu1 }
0x11b5   :  { %v2491_v61 = vmax.f32 %v2485_v55, 0.0 }
0x11b6   :  { %v2487_v57 = vpop.f32.mrf.mxu1 }
0x11b7   :  { %v2488_v58 = vadd.f32 %v2818_v53, %v2487_v57 }
0x11b8   :  { %v3199_v59 = vpop.f32.mrf.mxu1 }
0x11b9   :  { %v2492_v62 = vmax.f32 %v2488_v58, 0.0 }
0x11bb   :  { %v2493_v63 = vpack.c.bf16 %v2492_v62, %v2491_v61 }
0x11bd   :  { %3217 = vmatmul.mubr.bf16.vlgmr.msra.gmra.mxu0 %v2493_v63 }
0x127d   :  { %v2580_v2 = vpop.f32.mrf.mxu0 }
0x127e   :  { %v2581_v5 = vadd.f32 %v2822_v1, %v2580_v2 }
0x127f   :  { %v3218_v6 = vpop.f32.mrf.mxu0 }
0x1280   :  { %v2587_v7 = vadd.f32 %v2581_v5, %v2428_v60 }
0x1281   :  { %v2583_v8 = vpop.f32.mrf.mxu0 }
0x1282   :  { %v2584_v9 = vadd.f32 %v2822_v1, %v2583_v8  ;;  %v2589_v11 = vsel %vm112_vm1, %v2587_v7, 0.0 }
0x1283   :  { %2590 = vadd.xlane.f32.xlu1 %v2589_v11  ;;  %v3219_v38 = vpop.f32.mrf.mxu0 }
0x1284   :  { %v2588_v12 = vadd.f32 %v2584_v9, %v2429_v46 }
0x1286   :  { %v2592_v13 = vsel %vm112_vm1, %v2588_v12, 0.0 }
0x1287   :  { %2593 = vadd.xlane.f32.xlu0 %v2592_v13 }
0x130c   :  { %v2591_v15 = vpop.xlane.xlu1 %2590 }
0x130d   :  { %v2595_v16 = vmul.f32 0.03125, %v2591_v15 }
0x130f   :  { %v2597_v17 = vsub.f32 %v2587_v7, %v2595_v16 }
0x1310   :  { %v2594_v18 = vpop.xlane.xlu0 %2593 }
0x1311   :  { %v2596_v19 = vmul.f32 0.03125, %v2594_v18  ;;  %v2599_v20 = vmul.f32 %v2597_v17, %v2597_v17 }
0x1313   :  { %v2598_v21 = vsub.f32 %v2588_v12, %v2596_v19  ;;  %v2601_v22 = vsel %vm112_vm1, %v2599_v20, 0.0 }
0x1314   :  { %2602 = vadd.xlane.f32.xlu1 %v2601_v22 }
0x1315   :  { %v2600_v23 = vmul.f32 %v2598_v21, %v2598_v21 }
0x1317   :  { %v2604_v24 = vsel %vm112_vm1, %v2600_v23, 0.0 }
0x1318   :  { %2605 = vadd.xlane.f32.xlu0 %v2604_v24 }
0x139d   :  { %v2603_v14 = vpop.xlane.xlu1 %2602 }
0x139e   :  { %v2607_v27 = vmul.f32 0.03125, %v2603_v14 }
0x13a0   :  { %v2609_v10 = vadd.f32 1e-05, %v2607_v27 }
0x13a1   :  { %v2606_v28 = vpop.xlane.xlu0 %2605 }
0x13a2   :  { %3386 = vrsqrt.f32 %v2609_v10  ;;  %v2608_v50 = vmul.f32 0.03125, %v2606_v28 }
0x13a4   :  { %v2610_v56 = vadd.f32 1e-05, %v2608_v50 }
0x13a6   :  { %3388 = vrsqrt.f32 %v2610_v56 }
0x13af   :  { %v3387_v29 = vpop.eup %3386 }
0x13b0   :  { %v2613_v30 = vmul.f32 %v3387_v29, %v2597_v17 }
0x13b2   :  { %v2619_v34 = vmul.f32 %v2831_v31, %v2613_v30 }
0x13b3   :  { %v3389_v32 = vpop.eup %3388 }
0x13b4   :  { %v2614_v33 = vmul.f32 %v3389_v32, %v2598_v21  ;;  %v2625_v37 = vadd.f32 %v2832_v35, %v2619_v34 }
0x13b6   :  { %v2620_v36 = vmul.f32 %v2831_v31, %v2614_v33 }
0x13b8   :  { %v2626_v3 = vadd.f32 %v2832_v35, %v2620_v36 }
0x13ba   :  { %v2632_v0 = vpack.c.bf16 %v2626_v3, %v2625_v37 }
0x13bc   :  { %3225 = vmatmul.mubr.msk.bf16.vlgmr.msra.gmra.mxu1 %vm112_vm1, %v2632_v0 }
0x147c   :  { %v2686_v40 = vpop.f32.mrf.mxu1 }
0x147d   :  { %v2687_v4 = vadd.f32 %v2833_v39, %v2686_v40 }
0x147e   :  { %v3226_v41 = vpop.f32.mrf.mxu1 }
0x147f   :  { %v2693_v42 = vrot.slane %v2687_v4, 4 }
0x1480   :  { %v2689_v43 = vpop.f32.mrf.mxu1 }
0x1481   :  { %v2694_v44 = vmax.f32 %v2687_v4, %v2693_v42  ;;  %v2690_v45 = vadd.f32 %v2833_v39, %v2689_v43 }
0x1482   :  { %v3227_v60 = vpop.f32.mrf.mxu1 }
0x1483   :  { %v2695_v46 = vrot.slane %v2694_v44, 2  ;;  %v2712_v47 = vrot.slane %v2690_v45, 4 }
0x1485   :  { %v2696_v48 = vmax.f32 %v2694_v44, %v2695_v46  ;;  %v2713_v49 = vmax.f32 %v2690_v45, %v2712_v47 }
0x1487   :  { %v2697_v51 = vrot.slane %v2696_v48, 1  ;;  %v2714_v53 = vrot.slane %v2713_v49, 2 }
0x1489   :  { %v2698_v54 = vmax.f32 %v2696_v48, %v2697_v51  ;;  %v2715_v52 = vmax.f32 %v2713_v49, %v2714_v53 }
0x148b   :  { %v2699_v55 = vsub.f32 %v2687_v4, %v2698_v54  ;;  %v2716_v57 = vrot.slane %v2715_v52, 1 }
0x148d   :  { %v2700_v58 = vmul.f32 1.442695, %v2699_v55  ;;  %v2717_v59 = vmax.f32 %v2715_v52, %v2716_v57 }
0x148f   :  { %3390 = vpow2.f32 %v2700_v58  ;;  %v2718_v61 = vsub.f32 %v2690_v45, %v2717_v59 }
0x1491   :  { %v2719_v62 = vmul.f32 1.442695, %v2718_v61 }
0x1493   :  { %3392 = vpow2.f32 %v2719_v62 }
0x149c   :  { %v3391_v63 = vpop.eup %3390 }
0x149d   :  { %v2702_v1 = vrot.slane %v3391_v63, 4 }
0x149f   :  { %v2703_v2 = vadd.f32 %v3391_v63, %v2702_v1 }
0x14a0   :  { %v3393_v5 = vpop.eup %3392 }
0x14a1   :  { %v2704_v6 = vrot.slane %v2703_v2, 2  ;;  %v2721_v7 = vrot.slane %v3393_v5, 4 }
0x14a3   :  { %v2705_v8 = vadd.f32 %v2704_v6, %v2703_v2  ;;  %v2722_v9 = vadd.f32 %v3393_v5, %v2721_v7 }
0x14a5   :  { %v2706_v11 = vrot.slane %v2705_v8, 1  ;;  %v2723_v38 = vrot.slane %v2722_v9, 2 }
0x14a7   :  { %v2707_v12 = vadd.f32 %v2706_v11, %v2705_v8  ;;  %v2724_v13 = vadd.f32 %v2723_v38, %v2722_v9 }
0x14a9   :  { %3394 = vlog2.f32 %v2707_v12  ;;  %v2725_v15 = vrot.slane %v2724_v13, 1 }
0x14ab   :  { %v2726_v16 = vadd.f32 %v2725_v15, %v2724_v13 }
0x14ad   :  { %3396 = vlog2.f32 %v2726_v16 }
0x14b6   :  { %v3395_v17 = vpop.eup %3394 }
0x14b7   :  { %v2709_v18 = vmul.f32 0.6931472, %v3395_v17 }
0x14b9   :  { %v2710_v19 = vadd.f32 %v2709_v18, %v2698_v54 }
0x14ba   :  { %v3397_v20 = vpop.eup %3396 }
0x14bb   :  { %v2711_v21 = vsub.f32 %v2687_v4, %v2710_v19  ;;  %v2728_v22 = vmul.f32 0.6931472, %v3397_v20 }
0x14bd   :  { %v2729_v23 = vadd.f32 %v2728_v22, %v2717_v59  ;;  %2731 = vst [vmem:[#allocation8] sm:$0xff] %v2711_v21 }
0x14bf   :  { %v2730_v24 = vsub.f32 %v2690_v45, %v2729_v23 }
0x14c1   :  { %2732 = vst [vmem:[#allocation8 + $0x8] sm:$0xff] %v2730_v24 }
0x14c2   :  { %3469 = shalt.err (!%p3466_p5)
}
0x14c3   :  { %2744 = dma.vmem_to_hbm [thread:$0]  %s2739_s14, 256, %s3993_s3, [#allocation4], %s3488_s22, %s3488_s22, %s3489_s23  }
0x14c4   :  { %3482 = dma.done.wait [#allocation4], 256  }
0x14c5   :  { %3483 = vsyncadd [#allocation4], 4294967040 }
0x14c6   :  { %2748 = vsyncpa [#allocation3], 1 }
0x14c7   :  { %2749 = vsyncpa [#allocation6], 1 }
0x14c8   :  { %2750 = vsyncpa [#allocation4], 1 }

</bundles_post_ra>
